<compile_context>
chip_gen: v7x
topology: tpu7x:2x2x1
jax: 0.10.0
libtpu: 0.0.40
codegen_flags: <defaults>
</compile_context>

<pallas_src>
import collections
import functools

import jax
import jax.numpy as jnp
from jax import lax
from jax.experimental import pallas as pl
from jax.experimental.pallas import tpu as pltpu

F32 = jnp.float32
LANE = 128
NEG_MASK = -1e30   # masks zero-padded class columns out of the language softmax

# MXU operand dtype for the two large matmuls (conv, K|V).  jnp.bfloat16 gives
# 2-4x MXU throughput on v6e/v7x at production sizes; f32 keeps exact parity at
# these toy shapes and on v5e (accumulation is always f32).
MXU_DTYPE = jnp.float32

BusNetCfg = collections.namedtuple(
    "BusNetCfg", ["H", "W", "Cin", "T", "D", "C", "DP", "CP", "KP", "Bblk"])


def _round_up(n, m):
    return ((n + m - 1) // m) * m


def _pick_block_b(B, cap):
    """Largest batch block (<= cap) whose grid length is a multiple of 2 (keeps
    both v7x TensorCores busy); falls back to the largest divisor otherwise."""
    cap = max(1, min(B, cap))
    best = 1
    for bb in range(cap, 0, -1):
        if B % bb == 0:
            if (B // bb) % 2 == 0:
                return bb
            if best == 1:
                best = bb
    return best


# ------------------------------ fused kernel ------------------------------

def _busnet_fused_kernel(patch_ref, w_ref, b_ref, posq_ref, out_ref,
                         *, H, W, T, DP, CP, KP, Bblk, scale, mxu_dtype):
    HW = H * W
    M = Bblk * HW

    # Static, lane-aligned column offsets into the packed slabs.
    cwc, cwkv, cwe, cwl1, cwl2 = 0, DP, 3 * DP, 4 * DP, 5 * DP
    cwvh, cwlh, cwcf = 6 * DP, 7 * DP + CP, 8 * DP + 2 * CP
    bbc, bbkv, bbcv = 0, DP, 3 * DP
    bbl1, bbl2, bbcl = 3 * DP + CP, 4 * DP + CP, 5 * DP + CP
    bbg, bbcf = 5 * DP + 2 * CP, 6 * DP + 2 * CP

    patches = patch_ref[...].reshape(M, KP)                  # (Bblk*HW, KP)

    # ---- 3x3 conv as ONE lane-dense matmul over the padded patch dim ----
    feat = jnp.dot(patches.astype(mxu_dtype),
                   w_ref[0:KP, cwc:cwc + DP].astype(mxu_dtype),
                   preferred_element_type=F32) + b_ref[:, bbc:bbc + DP]
    feat = jnp.maximum(feat, 0.0)                            # (M, DP)

    # ---- fused K|V projection (single wide matmul, N = 2*DP) ----
    kv = jnp.dot(feat.astype(mxu_dtype),
                 w_ref[0:DP, cwkv:cwkv + 2 * DP].astype(mxu_dtype),
                 preferred_element_type=F32) + b_ref[:, bbkv:bbkv + 2 * DP]

    # ---- learned positional queries attend over each image's HW feature map ----
    # TODO(synk): the NT contraction transposes k (HW, DP) through the XLU per
    # image; fold pos_q into w_k wrapper-side if a bundle read shows it hot.
    q = posq_ref[...]                                        # (T, DP)
    vf_parts = []
    for b in range(Bblk):                                    # attention is per-image
        kb = kv[b * HW:(b + 1) * HW, 0:DP]
        vb = kv[b * HW:(b + 1) * HW, DP:2 * DP]
        s = lax.dot_general(q, kb, (((1,), (1,)), ((), ())),
                            preferred_element_type=F32) * scale   # (T, HW)
        s = s - jnp.max(s, axis=-1, keepdims=True)
        p = jnp.exp(s)
        p = p * pl.reciprocal(jnp.sum(p, axis=-1, keepdims=True), approx=True)
        vf_parts.append(jnp.dot(p, vb, preferred_element_type=F32))
    vf = vf_parts[0] if Bblk == 1 else jnp.concatenate(vf_parts, axis=0)  # (Bblk*T, DP)

    # ---- vision head fused with the vision half of the fusion gate (N=CP+DP) ----
    vo = jnp.dot(vf, w_ref[0:DP, cwvh:cwvh + CP + DP], preferred_element_type=F32)
    v_res = vo[:, 0:CP] + b_ref[:, bbcv:bbcv + CP]           # padded classes -> -1e30
    gv = vo[:, CP:CP + DP]

    # ---- language module: masked softmax -> embedding -> MLP ----
    ls = v_res - jnp.max(v_res, axis=-1, keepdims=True)
    lp = jnp.exp(ls)                                         # padded cols -> exactly 0
    lp = lp * pl.reciprocal(jnp.sum(lp, axis=-1, keepdims=True), approx=True)
    e = jnp.dot(lp, w_ref[0:CP, cwe:cwe + DP], preferred_element_type=F32)
    h = jnp.maximum(
        jnp.dot(e, w_ref[0:DP, cwl1:cwl1 + DP], preferred_element_type=F32)
        + b_ref[:, bbl1:bbl1 + DP], 0.0)
    lf = (jnp.dot(h, w_ref[0:DP, cwl2:cwl2 + DP], preferred_element_type=F32)
          + b_ref[:, bbl2:bbl2 + DP])

    # ---- language head fused with the language half of the gate (N=CP+DP) ----
    lo = jnp.dot(lf, w_ref[0:DP, cwlh:cwlh + CP + DP], preferred_element_type=F32)
    l_res = lo[:, 0:CP] + b_ref[:, bbcl:bbcl + CP]
    gl = lo[:, CP:CP + DP]

    # ---- gated fusion of vision / language features ----
    z = gv + gl + b_ref[:, bbg:bbg + DP]
    g = 0.5 * (jnp.tanh(0.5 * z) + 1.0)                      # stable sigmoid
    f = g * vf + (1.0 - g) * lf
    vl_res = (jnp.dot(f, w_ref[0:DP, cwcf:cwcf + CP], preferred_element_type=F32)
              + b_ref[:, bbcf:bbcf + CP])

    # ---- single lane-dense (Bblk, T, 3*CP) writeback: l_res | v_res | vl_res ----
    out_ref[...] = jnp.concatenate([l_res, v_res, vl_res], axis=1).reshape(Bblk, T, 3 * CP)


# -------------------------- parameters & packing --------------------------

def init_params(key, cin, hidden, num_classes, max_length):
    D, C, T = hidden, num_classes, max_length
    ks = jax.random.split(key, 16)

    def w(k, shape, fan_in):
        return jax.random.normal(k, shape, F32) / jnp.sqrt(jnp.asarray(fan_in, F32))

    return {
        "w_conv": w(ks[0], (9 * cin, D), 9 * cin), "b_conv": jnp.zeros((D,), F32),
        "w_k": w(ks[1], (D, D), D), "b_k": jnp.zeros((D,), F32),
        "w_v": w(ks[2], (D, D), D), "b_v": jnp.zeros((D,), F32),
        "pos_q": w(ks[3], (T, D), D),
        "w_cls_v": w(ks[4], (D, C), D), "b_cls_v": jnp.zeros((C,), F32),
        "w_embed": w(ks[5], (C, D), C),
        "w_l1": w(ks[6], (D, D), D), "b_l1": jnp.zeros((D,), F32),
        "w_l2": w(ks[7], (D, D), D), "b_l2": jnp.zeros((D,), F32),
        "w_cls_l": w(ks[8], (D, C), D), "b_cls_l": jnp.zeros((C,), F32),
        "w_g_v": w(ks[9], (D, D), D), "w_g_l": w(ks[10], (D, D), D),
        "b_g": jnp.zeros((D,), F32),
        "w_cls_f": w(ks[11], (D, C), D), "b_cls_f": jnp.zeros((C,), F32),
    }


def pad_and_fuse_params(params):
    """Zero-pad feature/class dims to lane width and pack everything into one
    weight slab, one bias slab and pos_q.  Padding is exact: padded feature
    columns stay identically zero, and padded class logits of the softmaxed
    vision head are masked to -1e30 so the language softmax ignores them."""
    D = params["w_k"].shape[0]
    C = params["w_cls_v"].shape[1]
    cin = params["w_conv"].shape[0] // 9
    T = params["pos_q"].shape[0]
    DP = _round_up(D, LANE)
    CP = _round_up(C, LANE)
    KP = _round_up(9 * cin, LANE)
    R = max(DP, CP, KP)                      # shared sublane extent of the slab

    def pad_w(w, rows, cols):
        return jnp.pad(w.astype(F32), ((0, rows - w.shape[0]), (0, cols - w.shape[1])))

    def pad_b(b, n, fill=0.0):
        out = jnp.full((n,), fill, F32)
        return out.at[:b.shape[0]].set(b.astype(F32))

    # Weight slab: every matrix padded to R rows, concatenated along lanes.
    w_slab = jnp.concatenate([
        pad_w(params["w_conv"], R, DP),                               # conv (uses KP rows)
        jnp.concatenate([pad_w(params["w_k"], R, DP),
                         pad_w(params["w_v"], R, DP)], axis=1),       # fused K|V
        pad_w(params["w_embed"], R, DP),                              # embed (uses CP rows)
        pad_w(params["w_l1"], R, DP),
        pad_w(params["w_l2"], R, DP),
        jnp.concatenate([pad_w(params["w_cls_v"], R, CP),
                         pad_w(params["w_g_v"], R, DP)], axis=1),     # vision head | v-gate
        jnp.concatenate([pad_w(params["w_cls_l"], R, CP),
                         pad_w(params["w_g_l"], R, DP)], axis=1),     # language head | l-gate
        pad_w(params["w_cls_f"], R, CP),
    ], axis=1)                                                        # (R, 8*DP + 3*CP)

    b_slab = jnp.concatenate([
        pad_b(params["b_conv"], DP),
        pad_b(params["b_k"], DP), pad_b(params["b_v"], DP),
        pad_b(params["b_cls_v"], CP, fill=NEG_MASK),
        pad_b(params["b_l1"], DP), pad_b(params["b_l2"], DP),
        pad_b(params["b_cls_l"], CP),
        pad_b(params["b_g"], DP),
        pad_b(params["b_cls_f"], CP),
    ])[None, :]                                                       # (1, 6*DP + 3*CP)

    pos_q = pad_w(params["pos_q"], T, DP)
    return {"w_slab": w_slab, "b_slab": b_slab, "pos_q": pos_q,
            "D": D, "C": C, "T": T, "Cin": cin, "DP": DP, "CP": CP, "KP": KP}


# -------------------------- jitted forward (glue) --------------------------

@functools.partial(jax.jit, static_argnames=("cfg",))
def _busnet_vl_forward(images, w_slab, b_slab, pos_q, *, cfg):
    H, W, Cin, T, C = cfg.H, cfg.W, cfg.Cin, cfg.T, cfg.C
    DP, CP, KP, Bblk = cfg.DP, cfg.CP, cfg.KP, cfg.Bblk
    B = images.shape[0]
    HW = H * W
    scale = 1.0 / float(cfg.D) ** 0.5

    # NCHW -> NHWC, spatial pad, and lane-dense (B, HW, KP) im2col patch matrix
    # (~128 KiB/image in HBM); all fused with the pallas_call by jit.
    x = jnp.transpose(images, (0, 2, 3, 1)).astype(F32)
    x = jnp.pad(x, ((0, 0), (1, 1), (1, 1), (0, 0)))
    taps = [x[:, ky:ky + H, kx:kx + W, :] for ky in range(3) for kx in range(3)]
    patches = jnp.concatenate(taps, axis=-1).reshape(B, HW, 9 * Cin)
    patches = jnp.pad(patches, ((0, 0), (0, 0), (0, KP - 9 * Cin)))

    kernel = functools.partial(
        _busnet_fused_kernel, H=H, W=W, T=T, DP=DP, CP=CP, KP=KP,
        Bblk=Bblk, scale=scale, mxu_dtype=MXU_DTYPE)

    out = pl.pallas_call(
        kernel,
        grid=(B // Bblk,),
        in_specs=[
            pl.BlockSpec((Bblk, HW, KP), lambda i: (i, 0, 0)),
            pl.BlockSpec(w_slab.shape, lambda i: (0, 0)),
            pl.BlockSpec(b_slab.shape, lambda i: (0, 0)),
            pl.BlockSpec((T, DP), lambda i: (0, 0)),
        ],
        out_specs=pl.BlockSpec((Bblk, T, 3 * CP), lambda i: (i, 0, 0)),
        out_shape=jax.ShapeDtypeStruct((B, T, 3 * CP), F32),
        compiler_params=pltpu.CompilerParams(
            dimension_semantics=("parallel",)),
    )(patches, w_slab, b_slab, pos_q)

    # Strip zero/masked class padding back to the logical class count.
    l_res = out[:, :, 0:C]
    v_res = out[:, :, CP:CP + C]
    vl_res = out[:, :, 2 * CP:2 * CP + C]
    return l_res, v_res, vl_res


def busnet_pretrain_forward(params, images, texts=None, *, training=False,
                            iter_size=1, block_b=None):
    """Mirrors busnet_pretrain.forward (eval returns vl_res of last iteration)."""
    if training:
        assert texts is not None and isinstance(texts[-1], (list, tuple)), \
            "SpellMutation must used. Please check."
        text_x, length_x = texts[-1][0], texts[-1][1]
    else:
        text_x, length_x = None, None
    # TODO(synk): training-time SpellMutation text branch (text_x, length_x) is not
    # reproducible without the original vision_language_reasoning_module source.
    del text_x, length_x

    pp = pad_and_fuse_params(params)        # packed once, reused across iterations
    B, Cin, H, W = images.shape
    assert Cin == pp["Cin"]
    if block_b is None:
        vmem_cap = max(1, (4 << 20) // (H * W * pp["KP"] * 4))   # ~4 MiB patch block
        block_b = _pick_block_b(B, vmem_cap)
    assert B % block_b == 0
    cfg = BusNetCfg(H=H, W=W, Cin=Cin, T=pp["T"], D=pp["D"], C=pp["C"],
                    DP=pp["DP"], CP=pp["CP"], KP=pp["KP"], Bblk=block_b)

    # TODO(synk): the original module's iterations may feed previous outputs back
    # into the reasoning module; without its source each iteration is independent.
    all_vl_res, all_l_res, all_v_res = [], [], []
    vl_res = None
    for _ in range(iter_size):
        l_res, v_res, vl_res = _busnet_vl_forward(
            images, pp["w_slab"], pp["b_slab"], pp["pos_q"], cfg=cfg)
        all_l_res.append(l_res)
        all_v_res.append(v_res)
        all_vl_res.append(vl_res)
    if training:
        return all_vl_res, all_l_res, all_v_res
    return vl_res


# --------------------------------- main ---------------------------------

if __name__ == "__main__":
    # config: dataset_max_length=7 -> max_length T=8; model_iter_size=1
    B, CIN, H, W = 2, 4, 16, 16
    HIDDEN, NUM_CLASSES, MAX_LENGTH, ITER_SIZE = 32, 40, 8, 1

    key = jax.random.PRNGKey(0)
    k_img, k_par = jax.random.split(key)
    images = jax.random.normal(k_img, (B, CIN, H, W), F32)   # NCHW like PyTorch
    params = init_params(k_par, CIN, HIDDEN, NUM_CLASSES, MAX_LENGTH)

    vl_res = busnet_pretrain_forward(params, images, training=False, iter_size=ITER_SIZE)
    vl_res = jax.block_until_ready(vl_res)

    assert vl_res.shape == (B, MAX_LENGTH, NUM_CLASSES)
    assert jnp.all(jnp.isfinite(vl_res))
    print("KERNEL_OK")
</pallas_src>

<mosaic_0001>
module attributes {stable_mosaic.version = 11 : i64} {
  func.func @_busnet_fused_kernel(%arg0: i32, %arg1: memref<1x256x128xf32, #tpu.memory_space<vmem>>, %arg2: memref<128x1408xf32, #tpu.memory_space<vmem>>, %arg3: memref<1x1152xf32, #tpu.memory_space<vmem>>, %arg4: memref<8x128xf32, #tpu.memory_space<vmem>>, %arg5: memref<1x8x384xf32, #tpu.memory_space<vmem>>) attributes {dimension_semantics = [#tpu.dimension_semantics<parallel>], iteration_bounds = array<i64: 2>, scalar_prefetch = 0 : i64, scratch_operands = 0 : i64, tpu.core_type = #tpu.core_type<tc>, window_params = [{transform_indices = @transform_0, window_bounds = array<i64: 1, 256, 128>}, {pipeline_mode = #tpu.pipeline_mode<synchronous>, transform_indices = @transform_1, window_bounds = array<i64: 128, 1408>}, {pipeline_mode = #tpu.pipeline_mode<synchronous>, transform_indices = @transform_2, window_bounds = array<i64: 1, 1152>}, {pipeline_mode = #tpu.pipeline_mode<synchronous>, transform_indices = @transform_3, window_bounds = array<i64: 8, 128>}, {transform_indices = @transform_4, window_bounds = array<i64: 1, 8, 384>}]} {
    %c0 = arith.constant 0 : index
    %c0_0 = arith.constant 0 : index
    %c0_1 = arith.constant 0 : index
    %0 = vector.load %arg1[%c0, %c0_0, %c0_1] : memref<1x256x128xf32, #tpu.memory_space<vmem>>, vector<1x256x128xf32>
    %1 = vector.shape_cast %0 : vector<1x256x128xf32> to vector<256x128xf32>
    %c0_2 = arith.constant 0 : index
    %c0_3 = arith.constant 0 : index
    %2 = vector.load %arg2[%c0_2, %c0_3] : memref<128x1408xf32, #tpu.memory_space<vmem>>, vector<128x128xf32>
    %cst = arith.constant dense<0.000000e+00> : vector<256x128xf32>
    %3 = tpu.matmul %1, %2, %cst {dimension_numbers = #tpu.dot_dimension_numbers<[1], [0], [0], [1], [0, 0, 1, 1], [], []>} : vector<256x128xf32>, vector<128x128xf32>, vector<256x128xf32> -> vector<256x128xf32>
    %c0_4 = arith.constant 0 : index
    %c0_5 = arith.constant 0 : index
    %4 = vector.load %arg3[%c0_4, %c0_5] : memref<1x1152xf32, #tpu.memory_space<vmem>>, vector<1x128xf32>
    %5 = vector.broadcast %4 : vector<1x128xf32> to vector<256x128xf32>
    %6 = arith.addf %3, %5 : vector<256x128xf32>
    %cst_6 = arith.constant 0.000000e+00 : f32
    %7 = vector.broadcast %cst_6 : f32 to vector<256x128xf32>
    %8 = arith.maximumf %6, %7 : vector<256x128xf32>
    %c0_7 = arith.constant 0 : index
    %c128 = arith.constant 128 : index
    %9 = vector.load %arg2[%c0_7, %c128] : memref<128x1408xf32, #tpu.memory_space<vmem>>, vector<128x256xf32>
    %cst_8 = arith.constant dense<0.000000e+00> : vector<256x256xf32>
    %10 = tpu.matmul %8, %9, %cst_8 {dimension_numbers = #tpu.dot_dimension_numbers<[1], [0], [0], [1], [0, 0, 1, 1], [], []>} : vector<256x128xf32>, vector<128x256xf32>, vector<256x256xf32> -> vector<256x256xf32>
    %c0_9 = arith.constant 0 : index
    %c128_10 = arith.constant 128 : index
    %11 = vector.load %arg3[%c0_9, %c128_10] : memref<1x1152xf32, #tpu.memory_space<vmem>>, vector<1x256xf32>
    %12 = vector.broadcast %11 : vector<1x256xf32> to vector<256x256xf32>
    %13 = arith.addf %10, %12 : vector<256x256xf32>
    %c0_11 = arith.constant 0 : index
    %c0_12 = arith.constant 0 : index
    %14 = vector.load %arg4[%c0_11, %c0_12] : memref<8x128xf32, #tpu.memory_space<vmem>>, vector<8x128xf32>
    %15 = vector.extract_strided_slice %13 {offsets = [0, 0], sizes = [256, 128], strides = [1, 1]} : vector<256x256xf32> to vector<256x128xf32>
    %16 = vector.extract_strided_slice %13 {offsets = [0, 128], sizes = [256, 128], strides = [1, 1]} : vector<256x256xf32> to vector<256x128xf32>
    %cst_13 = arith.constant dense<0.000000e+00> : vector<8x256xf32>
    %17 = tpu.matmul %14, %15, %cst_13 {dimension_numbers = #tpu.dot_dimension_numbers<[1], [1], [0], [0], [0, 0, 1, 0], [], []>} : vector<8x128xf32>, vector<256x128xf32>, vector<8x256xf32> -> vector<8x256xf32>
    %cst_14 = arith.constant 0.176776692 : f32
    %18 = vector.broadcast %cst_14 : f32 to vector<8x256xf32>
    %19 = arith.mulf %17, %18 : vector<8x256xf32>
    %cst_15 = arith.constant dense<0xFF800000> : vector<8xf32>
    %20 = vector.multi_reduction <maximumf>, %19, %cst_15 [1] : vector<8x256xf32> to vector<8xf32>
    %21 = vector.shape_cast %20 : vector<8xf32> to vector<8x1xf32>
    %22 = vector.broadcast %21 : vector<8x1xf32> to vector<8x256xf32>
    %23 = arith.subf %19, %22 : vector<8x256xf32>
    %24 = math.exp %23 : vector<8x256xf32>
    %cst_16 = arith.constant dense<0.000000e+00> : vector<8xf32>
    %25 = vector.multi_reduction <add>, %24, %cst_16 [1] : vector<8x256xf32> to vector<8xf32>
    %26 = vector.shape_cast %25 : vector<8xf32> to vector<8x1xf32>
    %27 = tpu.reciprocal %26 {approx = true} : vector<8x1xf32> -> vector<8x1xf32>
    %28 = vector.broadcast %27 : vector<8x1xf32> to vector<8x256xf32>
    %29 = arith.mulf %24, %28 : vector<8x256xf32>
    %cst_17 = arith.constant dense<0.000000e+00> : vector<8x128xf32>
    %30 = tpu.matmul %29, %16, %cst_17 {dimension_numbers = #tpu.dot_dimension_numbers<[1], [0], [0], [1], [0, 0, 1, 1], [], []>} : vector<8x256xf32>, vector<256x128xf32>, vector<8x128xf32> -> vector<8x128xf32>
    %c0_18 = arith.constant 0 : index
    %c768 = arith.constant 768 : index
    %31 = vector.load %arg2[%c0_18, %c768] : memref<128x1408xf32, #tpu.memory_space<vmem>>, vector<128x256xf32>
    %cst_19 = arith.constant dense<0.000000e+00> : vector<8x256xf32>
    %32 = tpu.matmul %30, %31, %cst_19 {dimension_numbers = #tpu.dot_dimension_numbers<[1], [0], [0], [1], [0, 0, 1, 1], [], []>} : vector<8x128xf32>, vector<128x256xf32>, vector<8x256xf32> -> vector<8x256xf32>
    %33 = vector.extract_strided_slice %32 {offsets = [0, 0], sizes = [8, 128], strides = [1, 1]} : vector<8x256xf32> to vector<8x128xf32>
    %c0_20 = arith.constant 0 : index
    %c384 = arith.constant 384 : index
    %34 = vector.load %arg3[%c0_20, %c384] : memref<1x1152xf32, #tpu.memory_space<vmem>>, vector<1x128xf32>
    %35 = vector.broadcast %34 : vector<1x128xf32> to vector<8x128xf32>
    %36 = arith.addf %33, %35 : vector<8x128xf32>
    %37 = vector.extract_strided_slice %32 {offsets = [0, 128], sizes = [8, 128], strides = [1, 1]} : vector<8x256xf32> to vector<8x128xf32>
    %cst_21 = arith.constant dense<0xFF800000> : vector<8xf32>
    %38 = vector.multi_reduction <maximumf>, %36, %cst_21 [1] : vector<8x128xf32> to vector<8xf32>
    %39 = vector.shape_cast %38 : vector<8xf32> to vector<8x1xf32>
    %40 = vector.broadcast %39 : vector<8x1xf32> to vector<8x128xf32>
    %41 = arith.subf %36, %40 : vector<8x128xf32>
    %42 = math.exp %41 : vector<8x128xf32>
    %cst_22 = arith.constant dense<0.000000e+00> : vector<8xf32>
    %43 = vector.multi_reduction <add>, %42, %cst_22 [1] : vector<8x128xf32> to vector<8xf32>
    %44 = vector.shape_cast %43 : vector<8xf32> to vector<8x1xf32>
    %45 = tpu.reciprocal %44 {approx = true} : vector<8x1xf32> -> vector<8x1xf32>
    %46 = vector.broadcast %45 : vector<8x1xf32> to vector<8x128xf32>
    %47 = arith.mulf %42, %46 : vector<8x128xf32>
    %c0_23 = arith.constant 0 : index
    %c384_24 = arith.constant 384 : index
    %48 = vector.load %arg2[%c0_23, %c384_24] : memref<128x1408xf32, #tpu.memory_space<vmem>>, vector<128x128xf32>
    %cst_25 = arith.constant dense<0.000000e+00> : vector<8x128xf32>
    %49 = tpu.matmul %47, %48, %cst_25 {dimension_numbers = #tpu.dot_dimension_numbers<[1], [0], [0], [1], [0, 0, 1, 1], [], []>} : vector<8x128xf32>, vector<128x128xf32>, vector<8x128xf32> -> vector<8x128xf32>
    %c0_26 = arith.constant 0 : index
    %c512 = arith.constant 512 : index
    %50 = vector.load %arg2[%c0_26, %c512] : memref<128x1408xf32, #tpu.memory_space<vmem>>, vector<128x128xf32>
    %cst_27 = arith.constant dense<0.000000e+00> : vector<8x128xf32>
    %51 = tpu.matmul %49, %50, %cst_27 {dimension_numbers = #tpu.dot_dimension_numbers<[1], [0], [0], [1], [0, 0, 1, 1], [], []>} : vector<8x128xf32>, vector<128x128xf32>, vector<8x128xf32> -> vector<8x128xf32>
    %c0_28 = arith.constant 0 : index
    %c512_29 = arith.constant 512 : index
    %52 = vector.load %arg3[%c0_28, %c512_29] : memref<1x1152xf32, #tpu.memory_space<vmem>>, vector<1x128xf32>
    %53 = vector.broadcast %52 : vector<1x128xf32> to vector<8x128xf32>
    %54 = arith.addf %51, %53 : vector<8x128xf32>
    %cst_30 = arith.constant 0.000000e+00 : f32
    %55 = vector.broadcast %cst_30 : f32 to vector<8x128xf32>
    %56 = arith.maximumf %54, %55 : vector<8x128xf32>
    %c0_31 = arith.constant 0 : index
    %c640 = arith.constant 640 : index
    %57 = vector.load %arg2[%c0_31, %c640] : memref<128x1408xf32, #tpu.memory_space<vmem>>, vector<128x128xf32>
    %cst_32 = arith.constant dense<0.000000e+00> : vector<8x128xf32>
    %58 = tpu.matmul %56, %57, %cst_32 {dimension_numbers = #tpu.dot_dimension_numbers<[1], [0], [0], [1], [0, 0, 1, 1], [], []>} : vector<8x128xf32>, vector<128x128xf32>, vector<8x128xf32> -> vector<8x128xf32>
    %c0_33 = arith.constant 0 : index
    %c640_34 = arith.constant 640 : index
    %59 = vector.load %arg3[%c0_33, %c640_34] : memref<1x1152xf32, #tpu.memory_space<vmem>>, vector<1x128xf32>
    %60 = vector.broadcast %59 : vector<1x128xf32> to vector<8x128xf32>
    %61 = arith.addf %58, %60 : vector<8x128xf32>
    %c0_35 = arith.constant 0 : index
    %c1024 = arith.constant 1024 : index
    %62 = vector.load %arg2[%c0_35, %c1024] : memref<128x1408xf32, #tpu.memory_space<vmem>>, vector<128x256xf32>
    %cst_36 = arith.constant dense<0.000000e+00> : vector<8x256xf32>
    %63 = tpu.matmul %61, %62, %cst_36 {dimension_numbers = #tpu.dot_dimension_numbers<[1], [0], [0], [1], [0, 0, 1, 1], [], []>} : vector<8x128xf32>, vector<128x256xf32>, vector<8x256xf32> -> vector<8x256xf32>
    %64 = vector.extract_strided_slice %63 {offsets = [0, 0], sizes = [8, 128], strides = [1, 1]} : vector<8x256xf32> to vector<8x128xf32>
    %c0_37 = arith.constant 0 : index
    %c768_38 = arith.constant 768 : index
    %65 = vector.load %arg3[%c0_37, %c768_38] : memref<1x1152xf32, #tpu.memory_space<vmem>>, vector<1x128xf32>
    %66 = vector.broadcast %65 : vector<1x128xf32> to vector<8x128xf32>
    %67 = arith.addf %64, %66 : vector<8x128xf32>
    %68 = vector.extract_strided_slice %63 {offsets = [0, 128], sizes = [8, 128], strides = [1, 1]} : vector<8x256xf32> to vector<8x128xf32>
    %69 = arith.addf %37, %68 : vector<8x128xf32>
    %c0_39 = arith.constant 0 : index
    %c896 = arith.constant 896 : index
    %70 = vector.load %arg3[%c0_39, %c896] : memref<1x1152xf32, #tpu.memory_space<vmem>>, vector<1x128xf32>
    %71 = vector.broadcast %70 : vector<1x128xf32> to vector<8x128xf32>
    %72 = arith.addf %69, %71 : vector<8x128xf32>
    %cst_40 = arith.constant 5.000000e-01 : f32
    %73 = vector.broadcast %cst_40 : f32 to vector<8x128xf32>
    %74 = arith.mulf %73, %72 : vector<8x128xf32>
    %75 = math.tanh %74 : vector<8x128xf32>
    %cst_41 = arith.constant 1.000000e+00 : f32
    %76 = vector.broadcast %cst_41 : f32 to vector<8x128xf32>
    %77 = arith.addf %75, %76 : vector<8x128xf32>
    %cst_42 = arith.constant 5.000000e-01 : f32
    %78 = vector.broadcast %cst_42 : f32 to vector<8x128xf32>
    %79 = arith.mulf %78, %77 : vector<8x128xf32>
    %80 = arith.mulf %79, %30 : vector<8x128xf32>
    %cst_43 = arith.constant 1.000000e+00 : f32
    %81 = vector.broadcast %cst_43 : f32 to vector<8x128xf32>
    %82 = arith.subf %81, %79 : vector<8x128xf32>
    %83 = arith.mulf %82, %61 : vector<8x128xf32>
    %84 = arith.addf %80, %83 : vector<8x128xf32>
    %c0_44 = arith.constant 0 : index
    %c1280 = arith.constant 1280 : index
    %85 = vector.load %arg2[%c0_44, %c1280] : memref<128x1408xf32, #tpu.memory_space<vmem>>, vector<128x128xf32>
    %cst_45 = arith.constant dense<0.000000e+00> : vector<8x128xf32>
    %86 = tpu.matmul %84, %85, %cst_45 {dimension_numbers = #tpu.dot_dimension_numbers<[1], [0], [0], [1], [0, 0, 1, 1], [], []>} : vector<8x128xf32>, vector<128x128xf32>, vector<8x128xf32> -> vector<8x128xf32>
    %c0_46 = arith.constant 0 : index
    %c1024_47 = arith.constant 1024 : index
    %87 = vector.load %arg3[%c0_46, %c1024_47] : memref<1x1152xf32, #tpu.memory_space<vmem>>, vector<1x128xf32>
    %88 = vector.broadcast %87 : vector<1x128xf32> to vector<8x128xf32>
    %89 = arith.addf %86, %88 : vector<8x128xf32>
    %90 = tpu.concatenate %67, %36, %89 in 1 : vector<8x128xf32>, vector<8x128xf32>, vector<8x128xf32> -> vector<8x384xf32>
    %91 = vector.shape_cast %90 : vector<8x384xf32> to vector<1x8x384xf32>
    %c0_48 = arith.constant 0 : index
    %c0_49 = arith.constant 0 : index
    %c0_50 = arith.constant 0 : index
    %92 = vector.load %arg5[%c0_48, %c0_49, %c0_50] : memref<1x8x384xf32, #tpu.memory_space<vmem>>, vector<1x8x384xf32>
    tpu.vector_store %arg5[%c0_48, %c0_49, %c0_50], %91 {strides = array<i32>} : memref<1x8x384xf32, #tpu.memory_space<vmem>>, vector<1x8x384xf32>,
    return
  }
  func.func @transform_0(%arg0: i32) -> (i32, i32, i32) {
    %c0_i32 = arith.constant 0 : i32
    %c0_i32_0 = arith.constant 0 : i32
    %c0_i32_1 = arith.constant 0 : i32
    return %arg0, %c0_i32, %c0_i32_0 : i32, i32, i32
  }
  func.func @transform_1(%arg0: i32) -> (i32, i32) {
    %c0_i32 = arith.constant 0 : i32
    %c0_i32_0 = arith.constant 0 : i32
    %c0_i32_1 = arith.constant 0 : i32
    return %c0_i32, %c0_i32_0 : i32, i32
  }
  func.func @transform_2(%arg0: i32) -> (i32, i32) {
    %c0_i32 = arith.constant 0 : i32
    %c0_i32_0 = arith.constant 0 : i32
    %c0_i32_1 = arith.constant 0 : i32
    return %c0_i32, %c0_i32_0 : i32, i32
  }
  func.func @transform_3(%arg0: i32) -> (i32, i32) {
    %c0_i32 = arith.constant 0 : i32
    %c0_i32_0 = arith.constant 0 : i32
    %c0_i32_1 = arith.constant 0 : i32
    return %c0_i32, %c0_i32_0 : i32, i32
  }
  func.func @transform_4(%arg0: i32) -> (i32, i32, i32) {
    %c0_i32 = arith.constant 0 : i32
    %c0_i32_0 = arith.constant 0 : i32
    %c0_i32_1 = arith.constant 0 : i32
    return %arg0, %c0_i32, %c0_i32_0 : i32, i32, i32
  }
}

</mosaic_0001>

<bundles_post_ra>
// kernel: _busnet_vl_forward.1
= control target key start
LH: loop header
LB: loop body
LE: loop exit
PB: predicated region body
PF: predicated region fallthrough
CT: control target
= control target key end

     0   :  { %s2413_s15 = smov 0   ;;  %s3398_s0 = inlined_call_operand.vmem [shape: f32[2,256,128], index: 0, kind: input, shape index: {}]   ;;  %s3399_s1 = inlined_call_operand.vmem [shape: f32[128,1408], index: 1, kind: input, shape index: {}]   ;;  %s3400_s2 = inlined_call_operand.vmem [shape: f32[1,1152], index: 2, kind: input, shape index: {}]   ;;  %s3401_s3 = inlined_call_operand.vmem [shape: f32[8,128], index: 3, kind: input, shape index: {}]   ;;  %s3402_s4 = inlined_call_operand.vmem [shape: f32[2,8,384], index: 4, kind: output, shape index: {}]  }
   0x1 LB: > { %s1642_s16 = sadd.s32 4294967295, %s2383_s15   ;;  %p1646_p0 = scmp.ge.s32.totalorder %s2383_s15, 1  ;;  %s2383_s15 = sphi %s2413_s15, %s14_s15  }
   0x2   : > { %p162_p1 = scmp.lt.s32.totalorder %s2383_s15, 3 }
   0x4   : > { %p163_p2 = pnand %p1646_p0, %p162_p1 }
   0x5   : > { %v230_v0 = vld [vmem:[%s3399_s1] sm:$0xff] (!%p163_p2)  ;;  %v231_v1 = vld [vmem:[%s3399_s1 + $0x58] sm:$0xff] (!%p163_p2)  ;;  %v232_v2 = vld [vmem:[%s3399_s1 + $0xb0] sm:$0xff] (!%p163_p2)  ;;  %p188_p3 = scmp.lt.s32.totalorder (!%p163_p2), %s1642_s16, 1  ;;  %vm2387_vm0 = vmmov (!%p163_p2), 0  }
   0x6   : > { %166 = sbr.rel (%p163_p2) target bundleno = 2976 (0xba0), region = 36  ;;  %v2065_v3 = vpack.c.bf16 (!%p163_p2), %v231_v1, %v230_v0  ;;  %v233_v4 = vld [vmem:[%s3399_s1 + $0x108] sm:$0xff] (!%p163_p2)  ;;  %v234_v6 = vld [vmem:[%s3399_s1 + $0x160] sm:$0xff] (!%p163_p2)  ;;  %v235_v7 = vld [vmem:[%s3399_s1 + $0x1b8] sm:$0xff] (!%p163_p2) }
   0x7   : > { %v2069_v5 = vpack.c.bf16 (!%p163_p2), %v233_v4, %v232_v2  ;;  %v2073_v8 = vpack.c.bf16 (!%p163_p2), %v235_v7, %v234_v6  ;;  %v511_v9 = vld [vmem:[%s3399_s1 + $0x10] sm:$0xff] (!%p163_p2)  ;;  %v513_v10 = vld [vmem:[%s3399_s1 + $0x68] sm:$0xff] (!%p163_p2)  ;;  %v238_v16 = vld [vmem:[%s3399_s1 + $0x2c0] sm:$0xff] (!%p163_p2) }
   0x8   : > { %2066 = vmatprep.subr.bf16.mxu0 (!%p163_p2), %v2065_v3  ;;  %v236_v11 = vld [vmem:[%s3399_s1 + $0x210] sm:$0xff] (!%p163_p2)  ;;  %v237_v12 = vld [vmem:[%s3399_s1 + $0x268] sm:$0xff] (!%p163_p2)  ;;  %v2097_v14 = vpack.c.bf16 (!%p163_p2), %v513_v10, %v511_v9  ;;  %v239_v17 = vld [vmem:[%s3399_s1 + $0x318] sm:$0xff] (!%p163_p2) }
   0x9   : > { %2068 = vmatpush3.bf16.msra.mxu0 (!%p163_p2), %v2065_v3  ;;  %v2077_v15 = vpack.c.bf16 (!%p163_p2), %v237_v12, %v236_v11  ;;  %v2081_v18 = vpack.c.bf16 (!%p163_p2), %v239_v17, %v238_v16  ;;  %v240_v19 = vld [vmem:[%s3399_s1 + $0x370] sm:$0xff] (!%p163_p2)  ;;  %v241_v20 = vld [vmem:[%s3399_s1 + $0x3c8] sm:$0xff] (!%p163_p2)  ;;  %v242_v21 = vld [vmem:[%s3399_s1 + $0x420] sm:$0xff] (!%p163_p2) }
   0xa   : > { %2070 = vmatprep.subr.bf16.mxu0 (!%p163_p2), %v2069_v5  ;;  %2098 = vmatprep.subr.bf16.mxu1 (!%p163_p2), %v2097_v14  ;;  %v243_v22 = vld [vmem:[%s3399_s1 + $0x478] sm:$0xff] (!%p163_p2)  ;;  %v510_v23 = vld [vmem:[%s3399_s1 + $0x8] sm:$0xff] (!%p163_p2)  ;;  %v2085_v24 = vpack.c.bf16 (!%p163_p2), %v241_v20, %v240_v19  ;;  %v512_v25 = vld [vmem:[%s3399_s1 + $0x60] sm:$0xff] (!%p163_p2) }
   0xb   : > { %v515_v26 = vld [vmem:[%s3399_s1 + $0xc0] sm:$0xff] (!%p163_p2)  ;;  %v517_v27 = vld [vmem:[%s3399_s1 + $0x118] sm:$0xff] (!%p163_p2)  ;;  %v2099_v28 = vpack.c.bf16 (!%p163_p2), %v512_v25, %v510_v23  ;;  %v516_v31 = vld [vmem:[%s3399_s1 + $0x110] sm:$0xff] (!%p163_p2)  ;;  %v2089_v35 = vpack.c.bf16 (!%p163_p2), %v243_v22, %v242_v21 }
   0xc   : > { %v2101_v29 = vpack.c.bf16 (!%p163_p2), %v517_v27, %v515_v26  ;;  %v514_v30 = vld [vmem:[%s3399_s1 + $0xb8] sm:$0xff] (!%p163_p2)  ;;  %v519_v32 = vld [vmem:[%s3399_s1 + $0x170] sm:$0xff] (!%p163_p2)  ;;  %v521_v33 = vld [vmem:[%s3399_s1 + $0x1c8] sm:$0xff] (!%p163_p2) }
   0xd   : > { %s3410_s16 = smov (!%p188_p3, %s1642_s16), 1  ;;  %2072 = vmatpush3.bf16.msra.mxu0 %v2069_v5  ;;  %2100 = vmatpush1.bf16.msra.mxu1 %v2099_v28  ;;  %v2103_v34 = vpack.c.bf16 %v516_v31, %v514_v30  ;;  %v244_v36 = vld [vmem:[%s3399_s1 + $0x4d0] sm:$0xff]  ;;  %v2105_v37 = vpack.c.bf16 %v521_v33, %v519_v32  ;;  %v518_v38 = vld [vmem:[%s3399_s1 + $0x168] sm:$0xff]  ;;  %v520_v39 = vld [vmem:[%s3399_s1 + $0x1c0] sm:$0xff] }
   0xe   : > { %s1659_s29 = sshll.u32 %s3410_s16, 8  ;;  %2074 = vmatprep.subr.bf16.mxu0 %v2073_v8  ;;  %2102 = vmatprep.subr.bf16.mxu1 %v2101_v29  ;;  %v245_v40 = vld [vmem:[%s3399_s1 + $0x528] sm:$0xff]  ;;  %v523_v41 = vld [vmem:[%s3399_s1 + $0x220] sm:$0xff]  ;;  %v525_v42 = vld [vmem:[%s3399_s1 + $0x278] sm:$0xff]  ;;  %v2107_v43 = vpack.c.bf16 %v520_v39, %v518_v38  ;;  %s2353_s22 = smul.u32 24, %s3410_s16 }
   0xf   : > { %s2445_s6 = scalar_lea.vmem %s3398_s0, %s1659_s29  ;;  %v2093_v44 = vpack.c.bf16 %v245_v40, %v244_v36  ;;  %v2109_v45 = vpack.c.bf16 %v525_v42, %v523_v41  ;;  %v522_v46 = vld [vmem:[%s3399_s1 + $0x218] sm:$0xff]  ;;  %v524_v47 = vld [vmem:[%s3399_s1 + $0x270] sm:$0xff]  ;;  %v529_v49 = vld [vmem:[%s3399_s1 + $0x328] sm:$0xff]  ;;  %v3403_v40 = vmov 0.0  }
  0x10   : > { %v198_v13 = vld [vmem:[%s2445_s6] sm:$0xff]  ;;  %v527_v48 = vld [vmem:[%s3399_s1 + $0x2d0] sm:$0xff]  ;;  %v2111_v50 = vpack.c.bf16 %v524_v47, %v522_v46  ;;  %v526_v52 = vld [vmem:[%s3399_s1 + $0x2c8] sm:$0xff]  ;;  %618 = vmatprep.mubr.f32.mxu1 %v3403_v40  ;;  %s3042_s26 = scalar_lea.vmem %s3402_s4, %s2353_s22 }
  0x11   : > { %1877 = vmatprep.mubr.f32.mxu0 %v198_v13  ;;  %2076 = vmatpush3.bf16.msra.mxu0 %v2073_v8  ;;  %v2113_v51 = vpack.c.bf16 %v529_v49, %v527_v48  ;;  %v528_v53 = vld [vmem:[%s3399_s1 + $0x320] sm:$0xff]  ;;  %v533_v55 = vld [vmem:[%s3399_s1 + $0x3d8] sm:$0xff]  ;;  %v199_v56 = vld [vmem:[%s2445_s6 + $0x8] sm:$0xff] }
  0x12   : > { %2078 = vmatprep.subr.bf16.mxu0 %v2077_v15  ;;  %2104 = vmatpush1.bf16.msra.mxu1 %v2103_v34  ;;  %v531_v54 = vld [vmem:[%s3399_s1 + $0x380] sm:$0xff]  ;;  %v2115_v57 = vpack.c.bf16 %v528_v53, %v526_v52  ;;  %v200_v58 = vld [vmem:[%s2445_s6 + $0x10] sm:$0xff]  ;;  %v530_v60 = vld [vmem:[%s3399_s1 + $0x378] sm:$0xff] }
  0x13   : > { %2106 = vmatprep.subr.bf16.mxu1 %v2105_v37  ;;  %v2117_v59 = vpack.c.bf16 %v533_v55, %v531_v54  ;;  %v532_v61 = vld [vmem:[%s3399_s1 + $0x3d0] sm:$0xff]  ;;  %v537_v63 = vld [vmem:[%s3399_s1 + $0x488] sm:$0xff]  ;;  %v201_v0 = vld [vmem:[%s2445_s6 + $0x18] sm:$0xff] }
  0x14   : > { %v535_v62 = vld [vmem:[%s3399_s1 + $0x430] sm:$0xff]  ;;  %v2119_v1 = vpack.c.bf16 %v532_v61, %v530_v60  ;;  %v202_v2 = vld [vmem:[%s2445_s6 + $0x20] sm:$0xff]  ;;  %v534_v4 = vld [vmem:[%s3399_s1 + $0x428] sm:$0xff] }
  0x15   : > { %2080 = vmatpush3.bf16.msra.mxu0 %v2077_v15  ;;  %v2121_v3 = vpack.c.bf16 %v537_v63, %v535_v62  ;;  %v536_v5 = vld [vmem:[%s3399_s1 + $0x480] sm:$0xff]  ;;  %v203_v6 = vld [vmem:[%s2445_s6 + $0x28] sm:$0xff]  ;;  %v204_v8 = vld [vmem:[%s2445_s6 + $0x30] sm:$0xff] }
  0x16   : > { %2082 = vmatprep.subr.bf16.mxu0 %v2081_v18  ;;  %2108 = vmatpush1.bf16.msra.mxu1 %v2107_v43  ;;  %v2123_v7 = vpack.c.bf16 %v536_v5, %v534_v4  ;;  %v205_v9 = vld [vmem:[%s2445_s6 + $0x38] sm:$0xff]  ;;  %v206_v10 = vld [vmem:[%s2445_s6 + $0x40] sm:$0xff]  ;;  %v207_v11 = vld [vmem:[%s2445_s6 + $0x48] sm:$0xff] }
  0x17   : > { %2110 = vmatprep.subr.bf16.mxu1 %v2109_v45  ;;  %v208_v12 = vld [vmem:[%s2445_s6 + $0x50] sm:$0xff]  ;;  %v209_v13 = vld [vmem:[%s2445_s6 + $0x58] sm:$0xff]  ;;  %v210_v14 = vld [vmem:[%s2445_s6 + $0x60] sm:$0xff] }
  0x18   : > { %v211_v15 = vld [vmem:[%s2445_s6 + $0x68] sm:$0xff]  ;;  %v212_v16 = vld [vmem:[%s2445_s6 + $0x70] sm:$0xff]  ;;  %v213_v17 = vld [vmem:[%s2445_s6 + $0x78] sm:$0xff] }
  0x19   : > { %2084 = vmatpush3.bf16.msra.mxu0 %v2081_v18  ;;  %v214_v18 = vld [vmem:[%s2445_s6 + $0x80] sm:$0xff]  ;;  %v215_v19 = vld [vmem:[%s2445_s6 + $0x88] sm:$0xff]  ;;  %v216_v20 = vld [vmem:[%s2445_s6 + $0x90] sm:$0xff] }
  0x1a   : > { %2086 = vmatprep.subr.bf16.mxu0 %v2085_v24  ;;  %2112 = vmatpush1.bf16.msra.mxu1 %v2111_v50  ;;  %v217_v21 = vld [vmem:[%s2445_s6 + $0x98] sm:$0xff]  ;;  %v218_v22 = vld [vmem:[%s2445_s6 + $0xa0] sm:$0xff]  ;;  %v219_v23 = vld [vmem:[%s2445_s6 + $0xa8] sm:$0xff] }
  0x1b   : > { %2114 = vmatprep.subr.bf16.mxu1 %v2113_v51  ;;  %v221_v25 = vld [vmem:[%s2445_s6 + $0xb8] sm:$0xff]  ;;  %v222_v26 = vld [vmem:[%s2445_s6 + $0xc0] sm:$0xff]  ;;  %v223_v27 = vld [vmem:[%s2445_s6 + $0xc8] sm:$0xff] }
  0x1c   : > { %v224_v28 = vld [vmem:[%s2445_s6 + $0xd0] sm:$0xff]  ;;  %v225_v29 = vld [vmem:[%s2445_s6 + $0xd8] sm:$0xff]  ;;  %v226_v30 = vld [vmem:[%s2445_s6 + $0xe0] sm:$0xff] }
  0x1d   : > { %2088 = vmatpush3.bf16.msra.mxu0 %v2085_v24  ;;  %v220_v24 = vld [vmem:[%s2445_s6 + $0xb0] sm:$0xff]  ;;  %v227_v31 = vld [vmem:[%s2445_s6 + $0xe8] sm:$0xff]  ;;  %v229_v33 = vld [vmem:[%s2445_s6 + $0xf8] sm:$0xff] }
  0x1e   : > { %2090 = vmatprep.subr.bf16.mxu0 %v2089_v35  ;;  %2116 = vmatpush1.bf16.msra.mxu1 %v2115_v57  ;;  %v228_v32 = vld [vmem:[%s2445_s6 + $0xf0] sm:$0xff]  ;;  %v539_v34 = vld [vmem:[%s3399_s1 + $0x4e0] sm:$0xff]  ;;  %v538_v37 = vld [vmem:[%s3399_s1 + $0x4d8] sm:$0xff] }
  0x1f   : > { %2118 = vmatprep.subr.bf16.mxu1 %v2117_v59  ;;  %v540_v38 = vld [vmem:[%s3399_s1 + $0x530] sm:$0xff]  ;;  %v2609_v41 = vld [vmem:[%s3400_s2] ss:$0 sm:$0xff] }
  0x20   : > { %v2127_v39 = vpack.c.bf16 %v540_v38, %v538_v37 }
  0x21   : > { %2092 = vmatpush3.bf16.msra.mxu0 %v2089_v35  ;;  %v541_v35 = vld [vmem:[%s3399_s1 + $0x538] sm:$0xff] }
  0x22   : > { %2094 = vmatprep.subr.bf16.mxu0 %v2093_v44  ;;  %2120 = vmatpush1.bf16.msra.mxu1 %v2119_v1  ;;  %v2125_v36 = vpack.c.bf16 %v541_v35, %v539_v34 }
  0x23   : > { %2122 = vmatprep.subr.bf16.mxu1 %v2121_v3 }
  0x25   : > { %2096 = vmatpush3.bf16.msra.mxu0 %v2093_v44 }
  0x26   : > { %2124 = vmatpush1.bf16.msra.mxu1 %v2123_v7 }
  0x27   : > { %2126 = vmatprep.subr.bf16.mxu1 %v2125_v36 }
  0x28   : > { %1878 = vmatmul.mubr.f32.vlgmr.msra.gmra.mrb[0].mxu0 %v199_v56 }
  0x29   : > { %1880 = vmatprep.mubr.f32.mxu0 %v200_v58 }
  0x2a   : > { %2128 = vmatpush1.bf16.msra.mxu1 %v2127_v39 }
  0x2c   : > { %1881 = vmatmul.mubr.f32.gmra.mrb[2].mxu0 %v201_v0 }
  0x2d   : > { %1883 = vmatprep.mubr.f32.mxu0 %v202_v2 }
  0x30   : > { %1884 = vmatmul.mubr.f32.gmra.mrb[4].mxu0 %v203_v6 }
  0x31   : > { %1886 = vmatprep.mubr.f32.mxu0 %v204_v8 }
  0x34   : > { %1887 = vmatmul.mubr.f32.gmra.mrb[6].mxu0 %v205_v9 }
  0x35   : > { %1889 = vmatprep.mubr.f32.mxu0 %v206_v10 }
  0x38   : > { %1890 = vmatmul.mubr.f32.gmra.mrb[8].mxu0 %v207_v11 }
  0x39   : > { %1892 = vmatprep.mubr.f32.mxu0 %v208_v12 }
  0x3c   : > { %1893 = vmatmul.mubr.f32.gmra.mrb[10].mxu0 %v209_v13 }
  0x3d   : > { %1895 = vmatprep.mubr.f32.mxu0 %v210_v14 }
  0x40   : > { %1896 = vmatmul.mubr.f32.gmra.mrb[12].mxu0 %v211_v15 }
  0x41   : > { %1898 = vmatprep.mubr.f32.mxu0 %v212_v16 }
  0x44   : > { %1899 = vmatmul.mubr.f32.gmra.mrb[14].mxu0 %v213_v17 }
  0x45   : > { %1901 = vmatprep.mubr.f32.mxu0 %v214_v18 }
  0x48   : > { %1902 = vmatmul.mubr.f32.gmra.mrb[16].mxu0 %v215_v19 }
  0x49   : > { %1904 = vmatprep.mubr.f32.mxu0 %v216_v20 }
  0x4c   : > { %1905 = vmatmul.mubr.f32.gmra.mrb[18].mxu0 %v217_v21 }
  0x4d   : > { %1907 = vmatprep.mubr.f32.mxu0 %v218_v22 }
  0x50   : > { %1908 = vmatmul.mubr.f32.gmra.mrb[20].mxu0 %v219_v23 }
  0x51   : > { %1910 = vmatprep.mubr.f32.mxu0 %v220_v24 }
  0x54   : > { %1911 = vmatmul.mubr.f32.gmra.mrb[22].mxu0 %v221_v25 }
  0x55   : > { %1913 = vmatprep.mubr.f32.mxu0 %v222_v26 }
  0x58   : > { %1914 = vmatmul.mubr.f32.gmra.mrb[24].mxu0 %v223_v27 }
  0x59   : > { %1916 = vmatprep.mubr.f32.mxu0 %v224_v28 }
  0x5c   : > { %1917 = vmatmul.mubr.f32.gmra.mrb[26].mxu0 %v225_v29 }
  0x5d   : > { %1919 = vmatprep.mubr.f32.mxu0 %v226_v30 }
  0x60   : > { %1920 = vmatmul.mubr.f32.gmra.mrb[28].mxu0 %v227_v31 }
  0x61   : > { %1922 = vmatprep.mubr.f32.mxu0 %v228_v32 }
  0x64   : > { %1923 = vmatmul.mubr.f32.gmra.mrb[30].mxu0 %v229_v33 }
  0xfb   : > { %v1879_v42 = vpop.f32.mrb[0].mxu0 }
  0xfc   : > { %v319_v43 = vpop.f32.mrb[1].mxu0  ;;  %v325_v45 = vadd.f32 %v1879_v42, %v2609_v41 }
  0xfd   : > { %v320_v44 = vadd.f32 %v2609_v41, %v319_v43 }
  0xfe   : > { %v479_v50 = vmax.f32 %v325_v45, 0.0 }
  0xff   : > { %v478_v46 = vmax.f32 %v320_v44, 0.0  ;;  %v1882_v47 = vpop.f32.mrb[2].mxu0 }
 0x100   : > { %v329_v48 = vpop.f32.mrb[3].mxu0  ;;  %v335_v54 = vadd.f32 %v1882_v47, %v2609_v41 }
 0x101   : > { %619 = vmatmul.mubr.f32.vlgmr.msra.gmra.mrb[0].mxu1 %v478_v46  ;;  %v330_v49 = vadd.f32 %v2609_v41, %v329_v48 }
 0x102   : > { %624 = vmatprep.mubr.f32.mxu1 %v3403_v40  ;;  %v481_v58 = vmax.f32 %v335_v54, 0.0 }
 0x103   : > { %v1885_v51 = vpop.f32.mrb[4].mxu0  ;;  %v480_v53 = vmax.f32 %v330_v49, 0.0 }
 0x104   : > { %v339_v52 = vpop.f32.mrb[5].mxu0  ;;  %v345_v62 = vadd.f32 %v1885_v51, %v2609_v41 }
 0x105   : > { %625 = vmatmul.mubr.f32.gmra.mrb[2].mxu1 %v479_v50  ;;  %v340_v57 = vadd.f32 %v2609_v41, %v339_v52 }
 0x106   : > { %630 = vmatprep.mubr.f32.mxu1 %v3403_v40  ;;  %v483_v2 = vmax.f32 %v345_v62, 0.0 }
 0x107   : > { %v1888_v55 = vpop.f32.mrb[6].mxu0  ;;  %v482_v61 = vmax.f32 %v340_v57, 0.0 }
 0x108   : > { %v349_v56 = vpop.f32.mrb[7].mxu0  ;;  %v355_v6 = vadd.f32 %v1888_v55, %v2609_v41 }
 0x109   : > { %631 = vmatmul.mubr.f32.gmra.mrb[4].mxu1 %v480_v53  ;;  %v350_v1 = vadd.f32 %v2609_v41, %v349_v56 }
 0x10a   : > { %636 = vmatprep.mubr.f32.mxu1 %v3403_v40  ;;  %v485_v10 = vmax.f32 %v355_v6, 0.0 }
 0x10b   : > { %v1891_v59 = vpop.f32.mrb[8].mxu0  ;;  %v484_v5 = vmax.f32 %v350_v1, 0.0 }
 0x10c   : > { %v359_v60 = vpop.f32.mrb[9].mxu0  ;;  %v365_v16 = vadd.f32 %v1891_v59, %v2609_v41 }
 0x10d   : > { %637 = vmatmul.mubr.f32.gmra.mrb[6].mxu1 %v481_v58  ;;  %v360_v9 = vadd.f32 %v2609_v41, %v359_v60 }
 0x10e   : > { %642 = vmatprep.mubr.f32.mxu1 %v3403_v40  ;;  %v487_v22 = vmax.f32 %v365_v16, 0.0 }
 0x10f   : > { %v1894_v63 = vpop.f32.mrb[10].mxu0  ;;  %v486_v14 = vmax.f32 %v360_v9, 0.0 }
 0x110   : > { %v369_v0 = vpop.f32.mrb[11].mxu0  ;;  %v375_v28 = vadd.f32 %v1894_v63, %v2609_v41 }
 0x111   : > { %643 = vmatmul.mubr.f32.gmra.mrb[8].mxu1 %v482_v61  ;;  %v370_v20 = vadd.f32 %v2609_v41, %v369_v0 }
 0x112   : > { %648 = vmatprep.mubr.f32.mxu1 %v3403_v40  ;;  %v489_v34 = vmax.f32 %v375_v28, 0.0 }
 0x113   : > { %v1897_v3 = vpop.f32.mrb[12].mxu0  ;;  %v488_v26 = vmax.f32 %v370_v20, 0.0  ;;  %v2696_v20 = vld [vmem:[%s3401_s3] sm:$0xff] }
 0x114   : > { %v379_v4 = vpop.f32.mrb[13].mxu0  ;;  %v385_v42 = vadd.f32 %v1897_v3, %v2609_v41  ;;  %1740 = vmatprep.mubr.f32.mxu0 %v2696_v20 }
 0x115   : > { %649 = vmatmul.mubr.f32.gmra.mrb[10].mxu1 %v483_v2  ;;  %v380_v32 = vadd.f32 %v2609_v41, %v379_v4 }
 0x116   : > { %654 = vmatprep.mubr.f32.mxu1 %v3403_v40  ;;  %v491_v48 = vmax.f32 %v385_v42, 0.0 }
 0x117   : > { %v1900_v7 = vpop.f32.mrb[14].mxu0  ;;  %v490_v38 = vmax.f32 %v380_v32, 0.0 }
 0x118   : > { %v389_v8 = vpop.f32.mrb[15].mxu0  ;;  %v395_v54 = vadd.f32 %v1900_v7, %v2609_v41 }
 0x119   : > { %655 = vmatmul.mubr.f32.gmra.mrb[12].mxu1 %v484_v5  ;;  %v390_v46 = vadd.f32 %v2609_v41, %v389_v8 }
 0x11a   : > { %660 = vmatprep.mubr.f32.mxu1 %v3403_v40  ;;  %v493_v59 = vmax.f32 %v395_v54, 0.0 }
 0x11b   : > { %v1903_v11 = vpop.f32.mrb[16].mxu0  ;;  %v492_v52 = vmax.f32 %v390_v46, 0.0 }
 0x11c   : > { %v2628_v12 = vadd.f32 %v1903_v11, %v2609_v41  ;;  %v399_v13 = vpop.f32.mrb[17].mxu0  ;;  %v544_v11 = vlaneseq }
 0x11d   : > { %661 = vmatmul.mubr.f32.gmra.mrb[14].mxu1 %v485_v10  ;;  %v400_v15 = vadd.f32 %v2609_v41, %v399_v13 }
 0x11e   : > { %666 = vmatprep.mubr.f32.mxu1 %v3403_v40  ;;  %v495_v61 = vmax.f32 %v2628_v12, 0.0  ;;  %v545_v12 = vshrl.u32 %v544_v11, 7 }
 0x11f   : > { %v1906_v17 = vpop.f32.mrb[18].mxu0  ;;  %v494_v60 = vmax.f32 %v400_v15, 0.0 }
 0x120   : > { %v2634_v18 = vadd.f32 %v1906_v17, %v2609_v41  ;;  %v409_v19 = vpop.f32.mrb[19].mxu0  ;;  %v546_v13 = vsub.s32 0, %v545_v12  ;;  %v550_v15 = vsub.s32 1, %v545_v12 }
 0x121   : > { %667 = vmatmul.mubr.f32.gmra.mrb[16].mxu1 %v486_v14  ;;  %v410_v21 = vadd.f32 %v2609_v41, %v409_v19  ;;  %v542_v14 = vld [vmem:[%s3400_s2 + $0x1] sm:$0x3] }
 0x122   : > { %672 = vmatprep.mubr.f32.mxu1 %v3403_v40  ;;  %v2689_v17 = vrot.slane %v542_v14, %v546_v13  ;;  %v2691_v19 = vrot.slane %v542_v14, %v550_v15 }
 0x123   : > { %v1909_v23 = vpop.f32.mrb[20].mxu0  ;;  %v496_v62 = vmax.f32 %v410_v21, 0.0 }
 0x124   : > { %v2640_v24 = vadd.f32 %v1909_v23, %v2609_v41  ;;  %v419_v25 = vpop.f32.mrb[21].mxu0 }
 0x125   : > { %673 = vmatmul.mubr.f32.gmra.mrb[18].mxu1 %v487_v22  ;;  %v420_v27 = vadd.f32 %v2609_v41, %v419_v25 }
 0x126   : > { %678 = vmatprep.mubr.f32.mxu1 %v3403_v40  ;;  %v499_v0 = vmax.f32 %v2640_v24, 0.0 }
 0x127   : > { %v1912_v29 = vpop.f32.mrb[22].mxu0  ;;  %v498_v63 = vmax.f32 %v420_v27, 0.0 }
 0x128   : > { %v2646_v30 = vadd.f32 %v1912_v29, %v2609_v41  ;;  %v429_v31 = vpop.f32.mrb[23].mxu0 }
 0x129   : > { %679 = vmatmul.mubr.f32.gmra.mrb[20].mxu1 %v488_v26  ;;  %v430_v33 = vadd.f32 %v2609_v41, %v429_v31 }
 0x12a   : > { %684 = vmatprep.mubr.f32.mxu1 %v3403_v40  ;;  %v501_v2 = vmax.f32 %v2646_v30, 0.0 }
 0x12b   : > { %v1915_v35 = vpop.f32.mrb[24].mxu0  ;;  %v500_v1 = vmax.f32 %v430_v33, 0.0 }
 0x12c   : > { %v445_v36 = vadd.f32 %v1915_v35, %v2609_v41  ;;  %v439_v37 = vpop.f32.mrb[25].mxu0 }
 0x12d   : > { %685 = vmatmul.mubr.f32.gmra.mrb[22].mxu1 %v489_v34  ;;  %v440_v39 = vadd.f32 %v2609_v41, %v439_v37 }
 0x12e   : > { %690 = vmatprep.mubr.f32.mxu1 %v3403_v40  ;;  %v503_v4 = vmax.f32 %v445_v36, 0.0 }
 0x12f   : > { %v1918_v43 = vpop.f32.mrb[26].mxu0  ;;  %v502_v3 = vmax.f32 %v440_v39, 0.0 }
 0x130   : > { %v455_v44 = vadd.f32 %v1918_v43, %v2609_v41  ;;  %v449_v45 = vpop.f32.mrb[27].mxu0 }
 0x131   : > { %691 = vmatmul.mubr.f32.gmra.mrb[24].mxu1 %v490_v38  ;;  %v450_v47 = vadd.f32 %v2609_v41, %v449_v45 }
 0x132   : > { %696 = vmatprep.mubr.f32.mxu1 %v3403_v40  ;;  %v505_v6 = vmax.f32 %v455_v44, 0.0 }
 0x133   : > { %v1921_v49 = vpop.f32.mrb[28].mxu0  ;;  %v504_v5 = vmax.f32 %v450_v47, 0.0 }
 0x134   : > { %v465_v50 = vadd.f32 %v1921_v49, %v2609_v41  ;;  %v459_v51 = vpop.f32.mrb[29].mxu0 }
 0x135   : > { %697 = vmatmul.mubr.f32.gmra.mrb[26].mxu1 %v491_v48  ;;  %v460_v53 = vadd.f32 %v2609_v41, %v459_v51 }
 0x136   : > { %702 = vmatprep.mubr.f32.mxu1 %v3403_v40  ;;  %v507_v8 = vmax.f32 %v465_v50, 0.0 }
 0x137   : > { %v1924_v55 = vpop.f32.mrb[30].mxu0  ;;  %v506_v7 = vmax.f32 %v460_v53, 0.0 }
 0x138   : > { %v475_v56 = vadd.f32 %v1924_v55, %v2609_v41  ;;  %v469_v57 = vpop.f32.mrb[31].mxu0 }
 0x139   : > { %703 = vmatmul.mubr.f32.gmra.mrb[28].mxu1 %v492_v52  ;;  %v470_v58 = vadd.f32 %v2609_v41, %v469_v57  ;;  %v497_v41 = vmax.f32 %v2634_v18, 0.0 }
 0x13a   : > { %708 = vmatprep.mubr.f32.mxu1 %v3403_v40  ;;  %v509_v10 = vmax.f32 %v475_v56, 0.0 }
 0x13b   : > { %v508_v9 = vmax.f32 %v470_v58, 0.0 }
 0x13d   : > { %709 = vmatmul.mubr.f32.gmra.mrb[30].mxu1 %v493_v59 }
 0x13e   : > { %714 = vmatprep.mubr.f32.mxu1 %v3403_v40 }
 0x141   : > { %715 = vmatmul.mubr.f32.gmra.mrb[32].mxu1 %v494_v60 }
 0x142   : > { %720 = vmatprep.mubr.f32.mxu1 %v3403_v40 }
 0x145   : > { %721 = vmatmul.mubr.f32.gmra.mrb[34].mxu1 %v495_v61 }
 0x146   : > { %726 = vmatprep.mubr.f32.mxu1 %v3403_v40 }
 0x149   : > { %727 = vmatmul.mubr.f32.gmra.mrb[36].mxu1 %v496_v62 }
 0x14a   : > { %732 = vmatprep.mubr.f32.mxu1 %v3403_v40 }
 0x14d   : > { %733 = vmatmul.mubr.f32.gmra.mrb[38].mxu1 %v497_v41 }
 0x14e   : > { %738 = vmatprep.mubr.f32.mxu1 %v3403_v40 }
 0x151   : > { %739 = vmatmul.mubr.f32.gmra.mrb[40].mxu1 %v498_v63 }
 0x152   : > { %744 = vmatprep.mubr.f32.mxu1 %v3403_v40 }
 0x155   : > { %745 = vmatmul.mubr.f32.gmra.mrb[42].mxu1 %v499_v0 }
 0x156   : > { %750 = vmatprep.mubr.f32.mxu1 %v3403_v40 }
 0x159   : > { %751 = vmatmul.mubr.f32.gmra.mrb[44].mxu1 %v500_v1 }
 0x15a   : > { %756 = vmatprep.mubr.f32.mxu1 %v3403_v40 }
 0x15d   : > { %757 = vmatmul.mubr.f32.gmra.mrb[46].mxu1 %v501_v2 }
 0x15e   : > { %762 = vmatprep.mubr.f32.mxu1 %v3403_v40 }
 0x161   : > { %763 = vmatmul.mubr.f32.gmra.mrb[48].mxu1 %v502_v3 }
 0x162   : > { %768 = vmatprep.mubr.f32.mxu1 %v3403_v40 }
 0x165   : > { %769 = vmatmul.mubr.f32.gmra.mrb[50].mxu1 %v503_v4 }
 0x166   : > { %774 = vmatprep.mubr.f32.mxu1 %v3403_v40 }
 0x169   : > { %775 = vmatmul.mubr.f32.gmra.mrb[52].mxu1 %v504_v5 }
 0x16a   : > { %780 = vmatprep.mubr.f32.mxu1 %v3403_v40 }
 0x16d   : > { %781 = vmatmul.mubr.f32.gmra.mrb[54].mxu1 %v505_v6 }
 0x16e   : > { %786 = vmatprep.mubr.f32.mxu1 %v3403_v40 }
 0x171   : > { %787 = vmatmul.mubr.f32.gmra.mrb[56].mxu1 %v506_v7 }
 0x172   : > { %792 = vmatprep.mubr.f32.mxu1 %v3403_v40 }
 0x175   : > { %793 = vmatmul.mubr.f32.gmra.mrb[58].mxu1 %v507_v8 }
 0x176   : > { %798 = vmatprep.mubr.f32.mxu1 %v3403_v40 }
 0x179   : > { %799 = vmatmul.mubr.f32.gmra.mrb[60].mxu1 %v508_v9 }
 0x17a   : > { %804 = vmatprep.mubr.f32.mxu1 %v3403_v40 }
 0x17d   : > { %805 = vmatmul.mubr.f32.gmra.mrb[62].mxu1 %v509_v10 }
 0x1d4   : > { %v620_v16 = vpop.f32.mrb[0].mxu1 }
 0x1d5   : > { %v622_v18 = vpop.f32.mrb[1].mxu1  ;;  %v2700_v22 = vadd.f32 %v620_v16, %v2689_v17 }
 0x1d6   : > { %v2706_v25 = vadd.f32 %v622_v18, %v2691_v19 }
 0x1d8   : > { %v626_v21 = vpop.f32.mrb[2].mxu1 }
 0x1d9   : > { %v2703_v23 = vadd.f32 %v626_v21, %v2689_v17  ;;  %v628_v24 = vpop.f32.mrb[3].mxu1 }
 0x1da   : > { %v2709_v26 = vadd.f32 %v628_v24, %v2691_v19 }
 0x1db   : > { %v2131_v27 = vpack.c.bf16 %v2703_v23, %v2700_v22 }
 0x1dc   : > { %v2163_v28 = vpack.c.bf16 %v2709_v26, %v2706_v25  ;;  %v632_v29 = vpop.f32.mrb[4].mxu1 }
 0x1dd   : > { %v634_v30 = vpop.f32.mrb[5].mxu1  ;;  %v2716_v32 = vadd.f32 %v632_v29, %v2689_v17 }
 0x1de   : > { %v2722_v35 = vadd.f32 %v634_v30, %v2691_v19 }
 0x1e0   : > { %v638_v31 = vpop.f32.mrb[6].mxu1 }
 0x1e1   : > { %v2719_v33 = vadd.f32 %v638_v31, %v2689_v17  ;;  %v640_v34 = vpop.f32.mrb[7].mxu1 }
 0x1e2   : > { %v2725_v36 = vadd.f32 %v640_v34, %v2691_v19 }
 0x1e3   : > { %v2135_v37 = vpack.c.bf16 %v2719_v33, %v2716_v32 }
 0x1e4   : > { %v2167_v38 = vpack.c.bf16 %v2725_v36, %v2722_v35  ;;  %v644_v39 = vpop.f32.mrb[8].mxu1 }
 0x1e5   : > { %v646_v42 = vpop.f32.mrb[9].mxu1  ;;  %v2732_v44 = vadd.f32 %v644_v39, %v2689_v17 }
 0x1e6   : > { %v2738_v47 = vadd.f32 %v646_v42, %v2691_v19 }
 0x1e8   : > { %v650_v43 = vpop.f32.mrb[10].mxu1 }
 0x1e9   : > { %v2735_v45 = vadd.f32 %v650_v43, %v2689_v17  ;;  %v652_v46 = vpop.f32.mrb[11].mxu1 }
 0x1ea   : > { %v2741_v48 = vadd.f32 %v652_v46, %v2691_v19 }
 0x1eb   : > { %v2139_v49 = vpack.c.bf16 %v2735_v45, %v2732_v44 }
 0x1ec   : > { %v2171_v50 = vpack.c.bf16 %v2741_v48, %v2738_v47  ;;  %v656_v51 = vpop.f32.mrb[12].mxu1 }
 0x1ed   : > { %v658_v52 = vpop.f32.mrb[13].mxu1  ;;  %v2748_v54 = vadd.f32 %v656_v51, %v2689_v17 }
 0x1ee   : > { %v2754_v57 = vadd.f32 %v658_v52, %v2691_v19 }
 0x1f0   : > { %v662_v53 = vpop.f32.mrb[14].mxu1 }
 0x1f1   : > { %v2751_v55 = vadd.f32 %v662_v53, %v2689_v17  ;;  %v664_v56 = vpop.f32.mrb[15].mxu1 }
 0x1f2   : > { %v2757_v58 = vadd.f32 %v664_v56, %v2691_v19 }
 0x1f3   : > { %v2143_v59 = vpack.c.bf16 %v2751_v55, %v2748_v54 }
 0x1f4   : > { %v2175_v60 = vpack.c.bf16 %v2757_v58, %v2754_v57  ;;  %v668_v61 = vpop.f32.mrb[16].mxu1 }
 0x1f5   : > { %v670_v62 = vpop.f32.mrb[17].mxu1  ;;  %v2764_v63 = vadd.f32 %v668_v61, %v2689_v17 }
 0x1f6   : > { %v2770_v2 = vadd.f32 %v670_v62, %v2691_v19 }
 0x1f8   : > { %v674_v41 = vpop.f32.mrb[18].mxu1 }
 0x1f9   : > { %v2767_v0 = vadd.f32 %v674_v41, %v2689_v17  ;;  %v676_v1 = vpop.f32.mrb[19].mxu1 }
 0x1fa   : > { %v2773_v3 = vadd.f32 %v676_v1, %v2691_v19 }
 0x1fb   : > { %v2147_v4 = vpack.c.bf16 %v2767_v0, %v2764_v63 }
 0x1fc   : > { %v2179_v5 = vpack.c.bf16 %v2773_v3, %v2770_v2  ;;  %v680_v6 = vpop.f32.mrb[20].mxu1  ;;  %v971_v3 = vld [vmem:[%s3399_s1 + $0x38] sm:$0xff] }
 0x1fd   : > { %v682_v7 = vpop.f32.mrb[21].mxu1  ;;  %v2780_v9 = vadd.f32 %v680_v6, %v2689_v17 }
 0x1fe   : > { %v2786_v12 = vadd.f32 %v682_v7, %v2691_v19 }
 0x200   : > { %v686_v8 = vpop.f32.mrb[22].mxu1 }
 0x201   : > { %v2783_v10 = vadd.f32 %v686_v8, %v2689_v17  ;;  %v688_v11 = vpop.f32.mrb[23].mxu1 }
 0x202   : > { %v2789_v13 = vadd.f32 %v688_v11, %v2691_v19 }
 0x203   : > { %v2151_v14 = vpack.c.bf16 %v2783_v10, %v2780_v9 }
 0x204   : > { %v692_v16 = vpop.f32.mrb[24].mxu1 }
 0x205   : > { %v694_v18 = vpop.f32.mrb[25].mxu1  ;;  %v2796_v24 = vadd.f32 %v692_v16, %v2689_v17 }
 0x206   : > { %v2802_v31 = vadd.f32 %v694_v18, %v2691_v19 }
 0x208   : > { %v698_v21 = vpop.f32.mrb[26].mxu1 }
 0x209   : > { %v2799_v29 = vadd.f32 %v698_v21, %v2689_v17  ;;  %v700_v30 = vpop.f32.mrb[27].mxu1 }
 0x20a   : > { %v2805_v34 = vadd.f32 %v700_v30, %v2691_v19 }
 0x20b   : > { %v2155_v39 = vpack.c.bf16 %v2799_v29, %v2796_v24  ;;  %v970_v24 = vld [vmem:[%s3399_s1 + $0x30] sm:$0xff]  ;;  %v972_v29 = vld [vmem:[%s3399_s1 + $0x88] sm:$0xff] }
 0x20c   : > { %v704_v43 = vpop.f32.mrb[28].mxu1 }
 0x20d   : > { %v706_v46 = vpop.f32.mrb[29].mxu1  ;;  %v2812_v52 = vadd.f32 %v704_v43, %v2689_v17 }
 0x20e   : > { %v2818_v61 = vadd.f32 %v706_v46, %v2691_v19 }
 0x210   : > { %v710_v51 = vpop.f32.mrb[30].mxu1 }
 0x211   : > { %v2815_v53 = vadd.f32 %v710_v51, %v2689_v17  ;;  %v712_v56 = vpop.f32.mrb[31].mxu1 }
 0x212   : > { %v2821_v62 = vadd.f32 %v712_v56, %v2691_v19 }
 0x213   : > { %v2159_v41 = vpack.c.bf16 %v2815_v53, %v2812_v52 }
 0x214   : > { %v716_v6 = vpop.f32.mrb[32].mxu1 }
 0x215   : > { %v718_v7 = vpop.f32.mrb[33].mxu1  ;;  %v717_v11 = vadd.f32 %v716_v6, %v2689_v17 }
 0x216   : > { %v2830_v21 = vadd.f32 %v718_v7, %v2691_v19 }
 0x218   : > { %v722_v8 = vpop.f32.mrb[34].mxu1 }
 0x219   : > { %v723_v16 = vadd.f32 %v722_v8, %v2689_v17  ;;  %v724_v18 = vpop.f32.mrb[35].mxu1 }
 0x21a   : > { %v2833_v30 = vadd.f32 %v724_v18, %v2691_v19 }
 0x21b   : > { %v2129_v43 = vpack.c.bf16 %v723_v16, %v717_v11 }
 0x21c   : > { %v2161_v46 = vpack.c.bf16 %v2833_v30, %v2830_v21  ;;  %v728_v51 = vpop.f32.mrb[36].mxu1  ;;  %v976_v21 = vld [vmem:[%s3399_s1 + $0x138] sm:$0xff] }
 0x21d   : > { %v730_v56 = vpop.f32.mrb[37].mxu1  ;;  %2130 = vmatprep.subr.bf16.mxu0 %v2129_v43  ;;  %v729_v8 = vadd.f32 %v728_v51, %v2689_v17  ;;  %v979_v30 = vld [vmem:[%s3399_s1 + $0x198] sm:$0xff] }
 0x21e   : > { %2132 = vmatpush3.bf16.xpose.msra.mxu0 %v2131_v27  ;;  %v2843_v18 = vadd.f32 %v730_v56, %v2691_v19 }
 0x220   : > { %v734_v6 = vpop.f32.mrb[38].mxu1 }
 0x221   : > { %v735_v7 = vadd.f32 %v734_v6, %v2689_v17  ;;  %v736_v40 = vpop.f32.mrb[39].mxu1 }
 0x222   : > { %v2846_v11 = vadd.f32 %v736_v40, %v2691_v19 }
 0x223   : > { %v2133_v16 = vpack.c.bf16 %v735_v7, %v729_v8 }
 0x224   : > { %v2165_v43 = vpack.c.bf16 %v2846_v11, %v2843_v18  ;;  %v740_v1 = vpop.f32.mrb[40].mxu1  ;;  %v3408_v11 = vmov 0.0  }
 0x225   : > { %v742_v42 = vpop.f32.mrb[41].mxu1  ;;  %2134 = vmatprep.subr.bf16.mxu0 %v2133_v16  ;;  %v741_v23 = vadd.f32 %v740_v1, %v2689_v17  ;;  %1957 = vmatprep.mubr.msk.f32.mxu1 %vm2387_vm0, %v3408_v11 }
 0x226   : > { %2136 = vmatpush3.bf16.xpose.msra.mxu0 %v2135_v37  ;;  %v2856_v40 = vadd.f32 %v742_v42, %v2691_v19 }
 0x228   : > { %v746_v22 = vpop.f32.mrb[42].mxu1 }
 0x229   : > { %v747_v27 = vadd.f32 %v746_v22, %v2689_v17  ;;  %v748_v51 = vpop.f32.mrb[43].mxu1 }
 0x22a   : > { %v2859_v56 = vadd.f32 %v748_v51, %v2691_v19 }
 0x22b   : > { %v2137_v6 = vpack.c.bf16 %v747_v27, %v741_v23 }
 0x22c   : > { %v2169_v8 = vpack.c.bf16 %v2859_v56, %v2856_v40  ;;  %v752_v7 = vpop.f32.mrb[44].mxu1  ;;  %v978_v40 = vld [vmem:[%s3399_s1 + $0x190] sm:$0xff]  ;;  %v980_v56 = vld [vmem:[%s3399_s1 + $0x1e8] sm:$0xff] }
 0x22d   : > { %v754_v16 = vpop.f32.mrb[45].mxu1  ;;  %2138 = vmatprep.subr.bf16.mxu0 %v2137_v6  ;;  %v753_v33 = vadd.f32 %v752_v7, %v2689_v17 }
 0x22e   : > { %2140 = vmatpush3.bf16.xpose.msra.mxu0 %v2139_v49  ;;  %v755_v1 = vadd.f32 %v754_v16, %v2691_v19 }
 0x230   : > { %v758_v32 = vpop.f32.mrb[46].mxu1 }
 0x231   : > { %v759_v37 = vadd.f32 %v758_v32, %v2689_v17  ;;  %v760_v42 = vpop.f32.mrb[47].mxu1 }
 0x232   : > { %v761_v22 = vadd.f32 %v760_v42, %v2691_v19 }
 0x233   : > { %v2141_v23 = vpack.c.bf16 %v759_v37, %v753_v33 }
 0x234   : > { %v2173_v27 = vpack.c.bf16 %v761_v22, %v755_v1  ;;  %v764_v51 = vpop.f32.mrb[48].mxu1 }
 0x235   : > { %v766_v15 = vpop.f32.mrb[49].mxu1  ;;  %2142 = vmatprep.subr.bf16.mxu0 %v2141_v23  ;;  %v765_v45 = vadd.f32 %v764_v51, %v2689_v17 }
 0x236   : > { %2144 = vmatpush3.bf16.xpose.msra.mxu0 %v2143_v59  ;;  %v767_v7 = vadd.f32 %v766_v15, %v2691_v19 }
 0x238   : > { %v770_v44 = vpop.f32.mrb[50].mxu1 }
 0x239   : > { %v771_v49 = vadd.f32 %v770_v44, %v2689_v17  ;;  %v772_v6 = vpop.f32.mrb[51].mxu1 }
 0x23a   : > { %v773_v16 = vadd.f32 %v772_v6, %v2691_v19 }
 0x23b   : > { %v2145_v32 = vpack.c.bf16 %v771_v49, %v765_v45 }
 0x23c   : > { %v2177_v33 = vpack.c.bf16 %v773_v16, %v767_v7  ;;  %v776_v37 = vpop.f32.mrb[52].mxu1 }
 0x23d   : > { %v778_v42 = vpop.f32.mrb[53].mxu1  ;;  %2146 = vmatprep.subr.bf16.mxu0 %v2145_v32  ;;  %v777_v55 = vadd.f32 %v776_v37, %v2689_v17 }
 0x23e   : > { %2148 = vmatpush3.bf16.xpose.msra.mxu0 %v2147_v4  ;;  %v779_v22 = vadd.f32 %v778_v42, %v2691_v19 }
 0x240   : > { %v782_v54 = vpop.f32.mrb[54].mxu1 }
 0x241   : > { %v783_v59 = vadd.f32 %v782_v54, %v2689_v17  ;;  %v784_v1 = vpop.f32.mrb[55].mxu1 }
 0x242   : > { %v785_v15 = vadd.f32 %v784_v1, %v2691_v19 }
 0x243   : > { %v2149_v23 = vpack.c.bf16 %v783_v59, %v777_v55 }
 0x244   : > { %v2181_v51 = vpack.c.bf16 %v785_v15, %v779_v22  ;;  %v788_v44 = vpop.f32.mrb[56].mxu1 }
 0x245   : > { %v790_v45 = vpop.f32.mrb[57].mxu1  ;;  %2150 = vmatprep.subr.bf16.mxu0 %v2149_v23  ;;  %v789_v0 = vadd.f32 %v788_v44, %v2689_v17  ;;  %v982_v23 = vld [vmem:[%s3399_s1 + $0x240] sm:$0xff]  ;;  %v987_v44 = vld [vmem:[%s3399_s1 + $0x2f8] sm:$0xff] }
 0x246   : > { %2152 = vmatpush3.bf16.xpose.msra.mxu0 %v2151_v14  ;;  %v791_v6 = vadd.f32 %v790_v45, %v2691_v19  ;;  %v989_v45 = vld [vmem:[%s3399_s1 + $0x350] sm:$0xff] }
 0x248   : > { %v794_v63 = vpop.f32.mrb[58].mxu1 }
 0x249   : > { %v795_v4 = vadd.f32 %v794_v63, %v2689_v17  ;;  %v796_v49 = vpop.f32.mrb[59].mxu1 }
 0x24a   : > { %v797_v7 = vadd.f32 %v796_v49, %v2691_v19  ;;  %v988_v49 = vld [vmem:[%s3399_s1 + $0x348] sm:$0xff] }
 0x24b   : > { %v2153_v16 = vpack.c.bf16 %v795_v4, %v789_v0  ;;  %v2209_v0 = vpack.c.bf16 %v989_v45, %v987_v44  ;;  %v986_v4 = vld [vmem:[%s3399_s1 + $0x2f0] sm:$0xff] }
 0x24c   : > { %v2185_v32 = vpack.c.bf16 %v797_v7, %v791_v6  ;;  %v800_v37 = vpop.f32.mrb[60].mxu1  ;;  %v991_v6 = vld [vmem:[%s3399_s1 + $0x3a8] sm:$0xff]  ;;  %v993_v7 = vld [vmem:[%s3399_s1 + $0x400] sm:$0xff]  ;;  %v1178_v44 = vld [vmem:[%s3399_s1 + $0xd0] sm:$0xff] }
 0x24d   : > { %v802_v42 = vpop.f32.mrb[61].mxu1  ;;  %2154 = vmatprep.subr.bf16.mxu0 %v2153_v16  ;;  %v801_v10 = vadd.f32 %v800_v37, %v2689_v17  ;;  %v2211_v16 = vpack.c.bf16 %v988_v49, %v986_v4  ;;  %v990_v37 = vld [vmem:[%s3399_s1 + $0x3a0] sm:$0xff]  ;;  %v1181_v49 = vld [vmem:[%s3399_s1 + $0x1d8] sm:$0xff] }
 0x24e   : > { %2156 = vmatpush3.bf16.xpose.msra.mxu0 %v2155_v39  ;;  %v803_v55 = vadd.f32 %v802_v42, %v2691_v19  ;;  %v992_v42 = vld [vmem:[%s3399_s1 + $0x3f8] sm:$0xff]  ;;  %v1180_v4 = vld [vmem:[%s3399_s1 + $0x180] sm:$0xff] }
 0x250   : > { %v806_v9 = vpop.f32.mrb[62].mxu1 }
 0x251   : > { %v807_v14 = vadd.f32 %v806_v9, %v2689_v17  ;;  %v808_v54 = vpop.f32.mrb[63].mxu1  ;;  %v3405_v17 = vpack.c.bf16 %v2789_v13, %v2786_v12  ;;  %v995_v9 = vld [vmem:[%s3399_s1 + $0x458] sm:$0xff] }
 0x252   : > { %v809_v59 = vadd.f32 %v808_v54, %v2691_v19  ;;  %v3406_v19 = vpack.c.bf16 %v2805_v34, %v2802_v31  ;;  %v975_v31 = vld [vmem:[%s3399_s1 + $0xe8] sm:$0xff]  ;;  %v977_v34 = vld [vmem:[%s3399_s1 + $0x140] sm:$0xff] }
 0x253   : > { %v2157_v1 = vpack.c.bf16 %v807_v14, %v801_v10  ;;  %v997_v10 = vld [vmem:[%s3399_s1 + $0x4b0] sm:$0xff]  ;;  %v2215_v14 = vpack.c.bf16 %v992_v42, %v990_v37  ;;  %v1184_v37 = vld [vmem:[%s3399_s1 + $0x2e0] sm:$0xff]  ;;  %v1185_v42 = vld [vmem:[%s3399_s1 + $0x338] sm:$0xff] }
 0x254   : > { %v2189_v22 = vpack.c.bf16 %v809_v59, %v803_v55  ;;  %v2217_v54 = vpack.c.bf16 %v997_v10, %v995_v9  ;;  %v994_v55 = vld [vmem:[%s3399_s1 + $0x450] sm:$0xff]  ;;  %v996_v59 = vld [vmem:[%s3399_s1 + $0x4a8] sm:$0xff]  ;;  %v2262_v9 = vpack.c.bf16 %v1185_v42, %v1184_v37 }
 0x255   : > { %2158 = vmatprep.subr.bf16.mxu0 %v2157_v1  ;;  %v2219_v1 = vpack.c.bf16 %v996_v59, %v994_v55  ;;  %v1186_v10 = vld [vmem:[%s3399_s1 + $0x390] sm:$0xff]  ;;  %v1188_v55 = vld [vmem:[%s3399_s1 + $0x440] sm:$0xff]  ;;  %v1189_v59 = vld [vmem:[%s3399_s1 + $0x498] sm:$0xff] }
 0x256   : > { %2160 = vmatpush3.bf16.xpose.msra.mxu0 %v2159_v41  ;;  %v974_v41 = vld [vmem:[%s3399_s1 + $0xe0] sm:$0xff] }
 0x257   : > { %2162 = vmatprep.subr.bf16.mxu0 %v2161_v46  ;;  %v981_v46 = vld [vmem:[%s3399_s1 + $0x1f0] sm:$0xff]  ;;  %v2199_v18 = vpack.c.bf16 %v976_v21, %v974_v41  ;;  %v1101_v41 = vld [vmem:[%s3399_s1 + $0x3e0] sm:$0xff] }
 0x25d   : > { %1741 = vmatmul.mubr.f32.vlgmr.msra.gmra.mrb[32].mxu0 %v2696_v20  ;;  %v3407_v20 = vpack.c.bf16 %v2821_v62, %v2818_v61  ;;  %v2195_v61 = vpack.c.bf16 %v972_v29, %v970_v24  ;;  %v2197_v62 = vpack.c.bf16 %v977_v34, %v975_v31  ;;  %v1095_v24 = vld [vmem:[%s3399_s1 + $0x1d0] sm:$0xff]  ;;  %v1096_v31 = vld [vmem:[%s3399_s1 + $0x228] sm:$0xff]  ;;  %v1097_v34 = vld [vmem:[%s3399_s1 + $0x280] sm:$0xff] }
 0x25e   : > { %2164 = vmatpush3.bf16.msra.mxu0 %v2163_v28 }
 0x25f   : > { %2166 = vmatprep.subr.bf16.mxu0 %v2165_v43  ;;  %v2201_v43 = vpack.c.bf16 %v981_v46, %v979_v30  ;;  %v1102_v30 = vld [vmem:[%s3399_s1 + $0x438] sm:$0xff]  ;;  %v1103_v46 = vld [vmem:[%s3399_s1 + $0x490] sm:$0xff] }
 0x262   : > { %2168 = vmatpush3.bf16.msra.mxu0 %v2167_v38 }
 0x263   : > { %2170 = vmatprep.subr.bf16.mxu0 %v2169_v8  ;;  %v983_v8 = vld [vmem:[%s3399_s1 + $0x248] sm:$0xff] }
 0x266   : > { %2172 = vmatpush3.bf16.msra.mxu0 %v2171_v50 }
 0x267   : > { %2174 = vmatprep.subr.bf16.mxu0 %v2173_v27  ;;  %v985_v27 = vld [vmem:[%s3399_s1 + $0x2a0] sm:$0xff] }
 0x268   : > { %v2205_v15 = vpack.c.bf16 %v985_v27, %v983_v8 }
 0x26a   : > { %2176 = vmatpush3.bf16.msra.mxu0 %v2175_v60 }
 0x26b   : > { %2178 = vmatprep.subr.bf16.mxu0 %v2177_v33  ;;  %v2203_v33 = vpack.c.bf16 %v980_v56, %v978_v40  ;;  %v1105_v40 = vld [vmem:[%s3399_s1 + $0x540] sm:$0xff] }
 0x26e   : > { %2180 = vmatpush3.bf16.msra.mxu0 %v2179_v5  ;;  %v973_v5 = vld [vmem:[%s3399_s1 + $0x90] sm:$0xff] }
 0x26f   : > { %2182 = vmatprep.subr.bf16.mxu0 %v2181_v51  ;;  %v2193_v12 = vpack.c.bf16 %v973_v5, %v971_v3  ;;  %v984_v51 = vld [vmem:[%s3399_s1 + $0x298] sm:$0xff]  ;;  %v1093_v5 = vld [vmem:[%s3399_s1 + $0x120] sm:$0xff] }
 0x270   : > { %v2207_v63 = vpack.c.bf16 %v984_v51, %v982_v23  ;;  %v1176_v23 = vld [vmem:[%s3399_s1 + $0x20] sm:$0xff]  ;;  %v1177_v51 = vld [vmem:[%s3399_s1 + $0x78] sm:$0xff] }
 0x271   : > { %v2250_v45 = vpack.c.bf16 %v1177_v51, %v1176_v23 }
 0x272   : > { %2184 = vmatpush3.bf16.msra.mxu0 %v3405_v17  ;;  %v1001_v17 = vld [vmem:[%s3399_s1 + $0x560] sm:$0xff] }
 0x273   : > { %2186 = vmatprep.subr.bf16.mxu0 %v2185_v32  ;;  %v2213_v32 = vpack.c.bf16 %v993_v7, %v991_v6  ;;  %v2256_v6 = vpack.c.bf16 %v1181_v49, %v1180_v4  ;;  %v1182_v7 = vld [vmem:[%s3399_s1 + $0x230] sm:$0xff] }
 0x276   : > { %2188 = vmatpush3.bf16.msra.mxu0 %v3406_v19 }
 0x277   : > { %2190 = vmatprep.subr.bf16.mxu0 %v2189_v22  ;;  %v999_v22 = vld [vmem:[%s3399_s1 + $0x508] sm:$0xff] }
 0x278   : > { %v2221_v19 = vpack.c.bf16 %v1001_v17, %v999_v22  ;;  %v1190_v22 = vld [vmem:[%s3399_s1 + $0x4f0] sm:$0xff]  ;;  %v1191_v17 = vld [vmem:[%s3399_s1 + $0x548] sm:$0xff] }
 0x27a   : > { %2192 = vmatpush3.bf16.msra.mxu0 %v3407_v20  ;;  %v998_v20 = vld [vmem:[%s3399_s1 + $0x500] sm:$0xff] }
 0x27b   : > { %2194 = vmatprep.subr.bf16.mxu0 %v2193_v12 }
 0x330   : > { %v878_v25 = vpop.f32.mrb[32].mxu0 }
 0x331   : > { %v883_v26 = vmul.f32 0.17677669, %v878_v25  ;;  %v880_v28 = vpop.f32.mrb[33].mxu0  ;;  %v1000_v25 = vld [vmem:[%s3399_s1 + $0x558] sm:$0xff] }
 0x332   : > { %v884_v35 = vmul.f32 0.17677669, %v880_v28 }
 0x334   : > { %v885_v36 = vmax.f32 %v883_v26, %v884_v35 }
 0x336   : > { %886 = vmax.xlane.f32.xlu0 %v885_v36 }
 0x3c3   : > { %v887_v38 = vpop.xlane.xlu0 %886 }
 0x3c4   : > { %v888_v47 = vsub.f32 %v883_v26, %v887_v38  ;;  %v889_v48 = vsub.f32 %v884_v35, %v887_v38  ;;  %v2223_v26 = vpack.c.bf16 %v1000_v25, %v998_v20  ;;  %v1651_v38 = vld [vmem:[%s3400_s2 + $0x3] ss:$0 sm:$0xff] }
 0x3c6   : > { %v890_v50 = vmul.f32 1.442695, %v888_v47  ;;  %v892_v57 = vmul.f32 1.442695, %v889_v48 }
 0x3c8   : > { %2365 = vpow2.f32 %v890_v50 }
 0x3c9   : > { %2367 = vpow2.f32 %v892_v57  ;;  %v1090_v57 = vld [vmem:[%s3399_s1 + $0x18] sm:$0xff] }
 0x3d2   : > { %v2366_v58 = vpop.eup %2365 }
 0x3d3   : > { %v2368_v60 = vpop.eup %2367 }
 0x3d4   : > { %v894_v2 = vadd.f32 %v2368_v60, %v2366_v58 }
 0x3d6   : > { %895 = vadd.xlane.f32.xlu0 %v894_v2  ;;  %v2386_v2 = vmov 0.0|0.0  }
 0x3d7   : > { %2225 = vmatprep.subr.bf16.mxu1 %v2386_v2 }
 0x463   : > { %v896_v13 = vpop.xlane.xlu0 %895 }
 0x464   : > { %2369 = vrcp.f32 %v896_v13  ;;  %v1094_v13 = vld [vmem:[%s3399_s1 + $0x178] sm:$0xff] }
 0x465   : > { %v2232_v29 = vpack.c.bf16 %v1095_v24, %v1094_v13  ;;  %v1278_v24 = vld [vmem:[%s3399_s1 + $0x2e8] sm:$0xff] }
 0x46e   : > { %v2370_v39 = vpop.eup %2369 }
 0x46f   : > { %v899_v52 = vmul.f32 %v2370_v39, %v2368_v60  ;;  %v898_v53 = vmul.f32 %v2370_v39, %v2366_v58  ;;  %v1091_v58 = vld [vmem:[%s3399_s1 + $0x70] sm:$0xff]  ;;  %v1092_v60 = vld [vmem:[%s3399_s1 + $0xc8] sm:$0xff]  ;;  %v2235_v39 = vpack.c.bf16 %v1097_v34, %v1096_v31  ;;  %v1280_v34 = vld [vmem:[%s3399_s1 + $0x398] sm:$0xff] }
 0x470   : > { %v2226_v3 = vpack.c.bf16 %v1091_v58, %v1090_v57  ;;  %v2229_v12 = vpack.c.bf16 %v1093_v5, %v1092_v60  ;;  %v1274_v58 = vld [vmem:[%s3399_s1 + $0x188] sm:$0xff]  ;;  %v1275_v60 = vld [vmem:[%s3399_s1 + $0x1e0] sm:$0xff]  ;;  %v1276_v5 = vld [vmem:[%s3399_s1 + $0x238] sm:$0xff] }
 0x471   : > { %964 = vmatprep.mubr.f32.mxu0 %v899_v52  ;;  %v1098_v52 = vld [vmem:[%s3399_s1 + $0x2d8] sm:$0xff] }
 0x472   : > { %965 = vmatmul.mubr.f32.vlgmr.msra.gmra.mrb[34].mxu0 %v898_v53  ;;  %2227 = vmatpush3.bf16.msra.mxu1 %v2226_v3  ;;  %v1099_v53 = vld [vmem:[%s3399_s1 + $0x330] sm:$0xff]  ;;  %v2280_v3 = vpack.c.bf16 %v1275_v60, %v1274_v58  ;;  %v1389_v58 = vld [vmem:[%s3399_s1 + $0x4b8] sm:$0xff] }
 0x473   : > { %2196 = vmatpush1.bf16.msra.mxu0 %v2195_v61  ;;  %1066 = vmatprep.mubr.f32.mxu0 %v3408_v11  ;;  %v2238_v61 = vpack.c.bf16 %v1099_v53, %v1098_v52  ;;  %v1282_v53 = vld [vmem:[%s3399_s1 + $0x448] sm:$0xff]  ;;  %v1392_v60 = vld [vmem:[%s3399_s1 + $0x518] sm:$0xff] }
 0x474   : > { %2198 = vmatprep.subr.bf16.mxu0 %v2197_v62  ;;  %2228 = vmatprep.subr.bf16.mxu1 %v2386_v2  ;;  %v1100_v62 = vld [vmem:[%s3399_s1 + $0x388] sm:$0xff] }
 0x475   : > { %v2241_v21 = vpack.c.bf16 %v1101_v41, %v1100_v62 }
 0x476   : > { %2230 = vmatpush3.bf16.msra.mxu1 %v2229_v12  ;;  %v1277_v12 = vld [vmem:[%s3399_s1 + $0x290] sm:$0xff] }
 0x477   : > { %2200 = vmatpush1.bf16.msra.mxu0 %v2199_v18  ;;  %2231 = vmatprep.subr.bf16.mxu1 %v2386_v2  ;;  %v2244_v18 = vpack.c.bf16 %v1103_v46, %v1102_v30  ;;  %v2283_v13 = vpack.c.bf16 %v1277_v12, %v1276_v5  ;;  %v1284_v30 = vld [vmem:[%s3399_s1 + $0x4f8] sm:$0xff]  ;;  %v1285_v46 = vld [vmem:[%s3399_s1 + $0x550] sm:$0xff] }
 0x478   : > { %2202 = vmatprep.subr.bf16.mxu0 %v2201_v43  ;;  %v1104_v43 = vld [vmem:[%s3399_s1 + $0x4e8] sm:$0xff] }
 0x479   : > { %v2247_v56 = vpack.c.bf16 %v1105_v40, %v1104_v43  ;;  %v1364_v43 = vld [vmem:[%s3399_s1 + $0x48] sm:$0xff]  ;;  %v1366_v40 = vld [vmem:[%s3399_s1 + $0xa0] sm:$0xff] }
 0x47a   : > { %2233 = vmatpush3.bf16.msra.mxu1 %v2232_v29  ;;  %v1279_v29 = vld [vmem:[%s3399_s1 + $0x340] sm:$0xff] }
 0x47b   : > { %2204 = vmatpush1.bf16.msra.mxu0 %v2203_v33  ;;  %2234 = vmatprep.subr.bf16.mxu1 %v2386_v2  ;;  %v2286_v31 = vpack.c.bf16 %v1279_v29, %v1278_v24 }
 0x47c   : > { %2206 = vmatprep.subr.bf16.mxu0 %v2205_v15 }
 0x47e   : > { %2236 = vmatpush3.bf16.msra.mxu1 %v2235_v39  ;;  %v1281_v39 = vld [vmem:[%s3399_s1 + $0x3f0] sm:$0xff] }
 0x47f   : > { %2208 = vmatpush1.bf16.msra.mxu0 %v2207_v63  ;;  %2237 = vmatprep.subr.bf16.mxu1 %v2386_v2  ;;  %v1179_v63 = vld [vmem:[%s3399_s1 + $0x128] sm:$0xff]  ;;  %v2289_v52 = vpack.c.bf16 %v1281_v39, %v1280_v34  ;;  %v1391_v39 = vld [vmem:[%s3399_s1 + $0x510] sm:$0xff] }
 0x480   : > { %2210 = vmatprep.subr.bf16.mxu0 %v2209_v0  ;;  %v2253_v0 = vpack.c.bf16 %v1179_v63, %v1178_v44  ;;  %v1367_v44 = vld [vmem:[%s3399_s1 + $0xf0] sm:$0xff]  ;;  %v1372_v63 = vld [vmem:[%s3399_s1 + $0x1a8] sm:$0xff] }
 0x482   : > { %2239 = vmatpush3.bf16.msra.mxu1 %v2238_v61  ;;  %v1283_v61 = vld [vmem:[%s3399_s1 + $0x4a0] sm:$0xff] }
 0x483   : > { %2212 = vmatpush1.bf16.msra.mxu0 %v2211_v16  ;;  %2240 = vmatprep.subr.bf16.mxu1 %v2386_v2  ;;  %v1183_v16 = vld [vmem:[%s3399_s1 + $0x288] sm:$0xff]  ;;  %v2292_v62 = vpack.c.bf16 %v1283_v61, %v1282_v53  ;;  %v1491_v61 = vld [vmem:[%s3399_s1 + $0x50] sm:$0xff] }
 0x484   : > { %2214 = vmatprep.subr.bf16.mxu0 %v2213_v32  ;;  %v2259_v32 = vpack.c.bf16 %v1183_v16, %v1182_v7  ;;  %v1373_v7 = vld [vmem:[%s3399_s1 + $0x1f8] sm:$0xff] }
 0x485   : > { %v1376_v16 = vld [vmem:[%s3399_s1 + $0x258] sm:$0xff] }
 0x486   : > { %2242 = vmatpush3.bf16.msra.mxu1 %v2241_v21 }
 0x487   : > { %2216 = vmatpush1.bf16.msra.mxu0 %v2215_v14  ;;  %2243 = vmatprep.subr.bf16.mxu1 %v2386_v2  ;;  %v1187_v14 = vld [vmem:[%s3399_s1 + $0x3e8] sm:$0xff] }
 0x488   : > { %2218 = vmatprep.subr.bf16.mxu0 %v2217_v54  ;;  %v2265_v54 = vpack.c.bf16 %v1187_v14, %v1186_v10  ;;  %v1377_v10 = vld [vmem:[%s3399_s1 + $0x2a8] sm:$0xff] }
 0x489   : > { %v1380_v14 = vld [vmem:[%s3399_s1 + $0x308] sm:$0xff] }
 0x48a   : > { %2245 = vmatpush3.bf16.msra.mxu1 %v2244_v18  ;;  %v2295_v18 = vpack.c.bf16 %v1285_v46, %v1284_v30 }
 0x48b   : > { %2220 = vmatpush1.bf16.msra.mxu0 %v2219_v1  ;;  %2246 = vmatprep.subr.bf16.mxu1 %v2386_v2  ;;  %v2268_v1 = vpack.c.bf16 %v1189_v59, %v1188_v55 }
 0x48c   : > { %2222 = vmatprep.subr.bf16.mxu0 %v2221_v19  ;;  %v2271_v19 = vpack.c.bf16 %v1191_v17, %v1190_v22  ;;  %v1381_v22 = vld [vmem:[%s3399_s1 + $0x358] sm:$0xff] }
 0x48d   : > { %v1384_v17 = vld [vmem:[%s3399_s1 + $0x3b8] sm:$0xff] }
 0x48e   : > { %2248 = vmatpush3.bf16.msra.mxu1 %v2247_v56  ;;  %v1363_v56 = vld [vmem:[%s3399_s1 + $0x40] sm:$0xff] }
 0x48f   : > { %2224 = vmatpush1.bf16.msra.mxu0 %v2223_v26  ;;  %2273 = vmatprep.subr.bf16.mxu1 %v2386_v2 }
 0x490   : > { %2249 = vmatprep.subr.bf16.mxu0 %v2386_v2 }
 0x545   : > { %v1774_v28 = vpop.f32.mrb[34].mxu0 }
 0x546   : > { %v1775_v35 = vpop.f32.mrb[35].mxu0 }
 0x547   : > { %v3032_v36 = vadd.f32 %v1775_v35, %v1774_v28  ;;  %v1270_v28 = vld [vmem:[%s3399_s1 + $0x28] sm:$0xff]  ;;  %v1271_v35 = vld [vmem:[%s3399_s1 + $0x80] sm:$0xff] }
 0x549   : > { %1067 = vmatmul.mubr.f32.vlgmr.msra.gmra.mrb[36].mxu0 %v3032_v36 }
 0x54a   : > { %1992 = vmatprep.mubr.msk.f32.mxu0 %vm2387_vm0, %v3408_v11  ;;  %2251 = vmatpush3.bf16.msra.mxu0 %v2250_v45  ;;  %v1369_v45 = vld [vmem:[%s3399_s1 + $0x148] sm:$0xff] }
 0x54b   : > { %2252 = vmatprep.subr.bf16.mxu0 %v2386_v2  ;;  %v2303_v4 = vpack.c.bf16 %v1369_v45, %v1367_v44  ;;  %v1500_v44 = vld [vmem:[%s3399_s1 + $0x368] sm:$0xff] }
 0x54e   : > { %2254 = vmatpush3.bf16.msra.mxu0 %v2253_v0  ;;  %v1374_v0 = vld [vmem:[%s3399_s1 + $0x200] sm:$0xff] }
 0x54f   : > { %2255 = vmatprep.subr.bf16.mxu0 %v2386_v2  ;;  %v2305_v49 = vpack.c.bf16 %v1374_v0, %v1372_v63  ;;  %v1501_v63 = vld [vmem:[%s3399_s1 + $0x3c0] sm:$0xff]  ;;  %v1502_v0 = vld [vmem:[%s3399_s1 + $0x418] sm:$0xff] }
 0x552   : > { %2257 = vmatpush3.bf16.msra.mxu0 %v2256_v6  ;;  %v1371_v6 = vld [vmem:[%s3399_s1 + $0x1a0] sm:$0xff] }
 0x553   : > { %2258 = vmatprep.subr.bf16.mxu0 %v2386_v2  ;;  %v2307_v37 = vpack.c.bf16 %v1373_v7, %v1371_v6  ;;  %v1504_v6 = vld [vmem:[%s3399_s1 + $0x4c8] sm:$0xff] }
 0x556   : > { %2260 = vmatpush3.bf16.msra.mxu0 %v2259_v32  ;;  %v1378_v32 = vld [vmem:[%s3399_s1 + $0x2b0] sm:$0xff] }
 0x557   : > { %2261 = vmatprep.subr.bf16.mxu0 %v2386_v2  ;;  %v2309_v42 = vpack.c.bf16 %v1378_v32, %v1376_v16  ;;  %v1505_v16 = vld [vmem:[%s3399_s1 + $0x520] sm:$0xff]  ;;  %v1506_v32 = vld [vmem:[%s3399_s1 + $0x578] sm:$0xff] }
 0x55a   : > { %2263 = vmatpush3.bf16.msra.mxu0 %v2262_v9  ;;  %v1375_v9 = vld [vmem:[%s3399_s1 + $0x250] sm:$0xff] }
 0x55b   : > { %2264 = vmatprep.subr.bf16.mxu0 %v2386_v2  ;;  %v2311_v55 = vpack.c.bf16 %v1377_v10, %v1375_v9 }
 0x55e   : > { %2266 = vmatpush3.bf16.msra.mxu0 %v2265_v54  ;;  %v1382_v54 = vld [vmem:[%s3399_s1 + $0x360] sm:$0xff] }
 0x55f   : > { %2267 = vmatprep.subr.bf16.mxu0 %v2386_v2  ;;  %v2313_v59 = vpack.c.bf16 %v1382_v54, %v1380_v14 }
 0x562   : > { %2269 = vmatpush3.bf16.msra.mxu0 %v2268_v1  ;;  %v1379_v1 = vld [vmem:[%s3399_s1 + $0x300] sm:$0xff] }
 0x563   : > { %2270 = vmatprep.subr.bf16.mxu0 %v2386_v2 }
 0x566   : > { %2272 = vmatpush3.bf16.msra.mxu0 %v2271_v19  ;;  %v1386_v19 = vld [vmem:[%s3399_s1 + $0x410] sm:$0xff] }
 0x61c   : > { %v1068_v47 = vpop.f32.mrb[36].mxu0 }
 0x61d   : > { %v1080_v48 = vadd.f32 %v1651_v38, %v1068_v47  ;;  %v3044_v50 = vpop.f32.mrb[37].mxu0  ;;  %v1272_v38 = vld [vmem:[%s3399_s1 + $0xd8] sm:$0xff]  ;;  %v2274_v47 = vpack.c.bf16 %v1271_v35, %v1270_v28  ;;  %v1385_v28 = vld [vmem:[%s3399_s1 + $0x408] sm:$0xff] }
 0x61e   : > { %v1388_v35 = vld [vmem:[%s3399_s1 + $0x468] sm:$0xff] }
 0x61f   : > { %1081 = vmax.xlane.f32.xlu1 %v1080_v48  ;;  %1585 = vst [vmem:[%s3042_s26 + $0x8] sm:$0xff] %v1080_v48 }
 0x6ac   : > { %v1082_v8 = vpop.xlane.xlu1 %1081 }
 0x6ad   : > { %v1083_v27 = vsub.f32 %v1080_v48, %v1082_v8  ;;  %v1273_v48 = vld [vmem:[%s3399_s1 + $0x130] sm:$0xff]  ;;  %v2297_v8 = vpack.c.bf16 %v1366_v40, %v1364_v43  ;;  %v1494_v43 = vld [vmem:[%s3399_s1 + $0x158] sm:$0xff] }
 0x6ae   : > { %v2277_v57 = vpack.c.bf16 %v1273_v48, %v1272_v38  ;;  %v1390_v38 = vld [vmem:[%s3399_s1 + $0x4c0] sm:$0xff] }
 0x6af   : > { %v1084_v33 = vmul.f32 1.442695, %v1083_v27  ;;  %v1365_v27 = vld [vmem:[%s3399_s1 + $0x98] sm:$0xff]  ;;  %2298 = vmatprep.subr.bf16.mxu0 %v2297_v8  ;;  %v2321_v48 = vpack.c.bf16 %v1390_v38, %v1388_v35  ;;  %v1496_v8 = vld [vmem:[%s3399_s1 + $0x208] sm:$0xff] }
 0x6b0   : > { %v2299_v23 = vpack.c.bf16 %v1365_v27, %v1363_v56  ;;  %v1495_v56 = vld [vmem:[%s3399_s1 + $0x1b0] sm:$0xff] }
 0x6b1   : > { %2371 = vpow2.f32 %v1084_v33  ;;  %v1368_v33 = vld [vmem:[%s3399_s1 + $0xf8] sm:$0xff]  ;;  %v2336_v27 = vpack.c.bf16 %v1496_v8, %v1495_v56 }
 0x6bb   : > { %v2372_v15 = vpop.eup %2371 }
 0x6bc   : > { %1086 = vadd.xlane.f32.xlu1 %v2372_v15 }
 0x749   : > { %v1087_v20 = vpop.xlane.xlu1 %1086 }
 0x74a   : > { %2373 = vrcp.f32 %v1087_v20  ;;  %v2315_v20 = vpack.c.bf16 %v1381_v22, %v1379_v1 }
 0x754   : > { %v2374_v25 = vpop.eup %2373 }
 0x755   : > { %v1089_v26 = vmul.f32 %v2374_v25, %v2372_v15  ;;  %v1370_v15 = vld [vmem:[%s3399_s1 + $0x150] sm:$0xff]  ;;  %v2317_v25 = vpack.c.bf16 %v1386_v19, %v1384_v17 }
 0x756   : > { %v2301_v51 = vpack.c.bf16 %v1370_v15, %v1368_v33  ;;  %v1497_v33 = vld [vmem:[%s3399_s1 + $0x260] sm:$0xff]  ;;  %v1498_v15 = vld [vmem:[%s3399_s1 + $0x2b8] sm:$0xff] }
 0x757   : > { %1958 = vmatmul.mubr.f32.vlgmr.msra.gmra.mrb[64].mxu1 %v1089_v26  ;;  %v1383_v26 = vld [vmem:[%s3399_s1 + $0x3b0] sm:$0xff] }
 0x758   : > { %2027 = vmatprep.mubr.msk.f32.mxu1 %vm2387_vm0, %v3408_v11  ;;  %2275 = vmatpush3.bf16.msra.mxu1 %v2274_v47  ;;  %v2319_v47 = vpack.c.bf16 %v1385_v28, %v1383_v26  ;;  %v1656_v28 = vld [vmem:[%s3400_s2 + $0x8] ss:$0 sm:$0xff] }
 0x759   : > { %2276 = vmatprep.subr.bf16.mxu1 %v2386_v2 }
 0x75c   : > { %2278 = vmatpush3.bf16.msra.mxu1 %v2277_v57  ;;  %v1387_v57 = vld [vmem:[%s3399_s1 + $0x460] sm:$0xff] }
 0x75d   : > { %2279 = vmatprep.subr.bf16.mxu1 %v2386_v2  ;;  %v2323_v5 = vpack.c.bf16 %v1389_v58, %v1387_v57 }
 0x760   : > { %2281 = vmatpush3.bf16.msra.mxu1 %v2280_v3  ;;  %v1394_v3 = vld [vmem:[%s3399_s1 + $0x570] sm:$0xff] }
 0x761   : > { %2282 = vmatprep.subr.bf16.mxu1 %v2386_v2  ;;  %v2325_v12 = vpack.c.bf16 %v1394_v3, %v1392_v60 }
 0x764   : > { %2284 = vmatpush3.bf16.msra.mxu1 %v2283_v13  ;;  %v1652_v13 = vld [vmem:[%s3400_s2 + $0x4] ss:$0 sm:$0xff] }
 0x765   : > { %2285 = vmatprep.subr.bf16.mxu1 %v2386_v2 }
 0x768   : > { %2287 = vmatpush3.bf16.msra.mxu1 %v2286_v31 }
 0x769   : > { %2288 = vmatprep.subr.bf16.mxu1 %v2386_v2 }
 0x76c   : > { %2290 = vmatpush3.bf16.msra.mxu1 %v2289_v52  ;;  %v1393_v52 = vld [vmem:[%s3399_s1 + $0x568] sm:$0xff] }
 0x76d   : > { %2291 = vmatprep.subr.bf16.mxu1 %v2386_v2  ;;  %v2327_v53 = vpack.c.bf16 %v1393_v52, %v1391_v39 }
 0x770   : > { %2293 = vmatpush3.bf16.msra.mxu1 %v2292_v62  ;;  %v1492_v62 = vld [vmem:[%s3399_s1 + $0xa8] sm:$0xff] }
 0x771   : > { %2294 = vmatprep.subr.bf16.mxu1 %v2386_v2 }
 0x774   : > { %2296 = vmatpush3.bf16.msra.mxu1 %v2295_v18  ;;  %v1493_v18 = vld [vmem:[%s3399_s1 + $0x100] sm:$0xff] }
 0x775   : > { %2329 = vmatprep.subr.bf16.mxu1 %v2386_v2  ;;  %v2333_v40 = vpack.c.bf16 %v1494_v43, %v1493_v18 }
 0x82a   : > { %v1172_v41 = vpop.f32.mrb[64].mxu1 }
 0x82b   : > { %v1959_v21 = vpop.f32.mrb[65].mxu1  ;;  %1993 = vmatmul.mubr.f32.vlgmr.msra.gmra.mrb[38].mxu0 %v1172_v41  ;;  %v2330_v41 = vpack.c.bf16 %v1492_v62, %v1491_v61 }
 0x82c   : > { %1459 = vmatprep.mubr.f32.mxu0 %v3408_v11  ;;  %2300 = vmatpush1.bf16.msra.mxu0 %v2299_v23  ;;  %v2339_v23 = vpack.c.bf16 %v1498_v15, %v1497_v33 }
 0x82d   : > { %2302 = vmatprep.subr.bf16.mxu0 %v2301_v51  ;;  %v1499_v51 = vld [vmem:[%s3399_s1 + $0x310] sm:$0xff] }
 0x82e   : > { %v2342_v45 = vpack.c.bf16 %v1500_v44, %v1499_v51 }
 0x830   : > { %2304 = vmatpush1.bf16.msra.mxu0 %v2303_v4  ;;  %v2345_v4 = vpack.c.bf16 %v1502_v0, %v1501_v63 }
 0x831   : > { %2306 = vmatprep.subr.bf16.mxu0 %v2305_v49  ;;  %v1503_v49 = vld [vmem:[%s3399_s1 + $0x470] sm:$0xff] }
 0x832   : > { %v2348_v7 = vpack.c.bf16 %v1504_v6, %v1503_v49 }
 0x834   : > { %2308 = vmatpush1.bf16.msra.mxu0 %v2307_v37  ;;  %v2351_v37 = vpack.c.bf16 %v1506_v32, %v1505_v16 }
 0x835   : > { %2310 = vmatprep.subr.bf16.mxu0 %v2309_v42  ;;  %v1654_v42 = vld [vmem:[%s3400_s2 + $0x6] ss:$0 sm:$0xff] }
 0x838   : > { %2312 = vmatpush1.bf16.msra.mxu0 %v2311_v55 }
 0x839   : > { %2314 = vmatprep.subr.bf16.mxu0 %v2313_v59 }
 0x83c   : > { %2316 = vmatpush1.bf16.msra.mxu0 %v2315_v20 }
 0x83d   : > { %2318 = vmatprep.subr.bf16.mxu0 %v2317_v25 }
 0x840   : > { %2320 = vmatpush1.bf16.msra.mxu0 %v2319_v47 }
 0x841   : > { %2322 = vmatprep.subr.bf16.mxu0 %v2321_v48 }
 0x844   : > { %2324 = vmatpush1.bf16.msra.mxu0 %v2323_v5 }
 0x845   : > { %2326 = vmatprep.subr.bf16.mxu0 %v2325_v12 }
 0x848   : > { %2328 = vmatpush1.bf16.msra.mxu0 %v2327_v53 }
 0x8fe   : > { %v1265_v24 = vpop.f32.mrb[38].mxu0 }
 0x8ff   : > { %v1266_v29 = vadd.f32 %v1652_v13, %v1265_v24  ;;  %v1994_v31 = vpop.f32.mrb[39].mxu0 }
 0x901   : > { %v1269_v34 = vmax.f32 %v1266_v29, 0.0 }
 0x903   : > { %2028 = vmatmul.mubr.f32.vlgmr.msra.gmra.mrb[66].mxu1 %v1269_v34 }
 0x904   : > { %2062 = vmatprep.mubr.msk.f32.mxu1 %vm2387_vm0, %v3408_v11  ;;  %2331 = vmatpush3.bf16.msra.mxu1 %v2330_v41  ;;  %v1653_v11 = vld [vmem:[%s3400_s2 + $0x5] ss:$0 sm:$0xff] }
 0x905   : > { %2332 = vmatprep.subr.bf16.mxu1 %v2386_v2 }
 0x908   : > { %2334 = vmatpush3.bf16.msra.mxu1 %v2333_v40 }
 0x909   : > { %2335 = vmatprep.subr.bf16.mxu1 %v2386_v2 }
 0x90c   : > { %2337 = vmatpush3.bf16.msra.mxu1 %v2336_v27 }
 0x90d   : > { %2338 = vmatprep.subr.bf16.mxu1 %v2386_v2 }
 0x910   : > { %2340 = vmatpush3.bf16.msra.mxu1 %v2339_v23 }
 0x911   : > { %2341 = vmatprep.subr.bf16.mxu1 %v2386_v2 }
 0x914   : > { %2343 = vmatpush3.bf16.msra.mxu1 %v2342_v45 }
 0x915   : > { %2344 = vmatprep.subr.bf16.mxu1 %v2386_v2 }
 0x918   : > { %2346 = vmatpush3.bf16.msra.mxu1 %v2345_v4 }
 0x919   : > { %2347 = vmatprep.subr.bf16.mxu1 %v2386_v2 }
 0x91c   : > { %2349 = vmatpush3.bf16.msra.mxu1 %v2348_v7 }
 0x91d   : > { %2350 = vmatprep.subr.bf16.mxu1 %v2386_v2  ;;  %v1655_v2 = vld [vmem:[%s3400_s2 + $0x7] ss:$0 sm:$0xff] }
 0x920   : > { %2352 = vmatpush3.bf16.msra.mxu1 %v2351_v37 }
 0x9d6   : > { %v1359_v21 = vpop.f32.mrb[66].mxu1 }
 0x9d7   : > { %v1360_v30 = vadd.f32 %v1653_v11, %v1359_v21  ;;  %v2029_v46 = vpop.f32.mrb[67].mxu1 }
 0x9d9   : > { %1460 = vmatmul.mubr.f32.vlgmr.msra.gmra.mrb[40].mxu0 %v1360_v30 }
 0xaac   : > { %v1461_v9 = vpop.f32.mrb[40].mxu0 }
 0xaad   : > { %v1473_v10 = vadd.f32 %v1654_v42, %v1461_v9  ;;  %v1463_v14 = vpop.f32.mrb[41].mxu0 }
 0xaae   : > { %v1474_v54 = vadd.f32 %v1463_v14, %v3044_v50 }
 0xaaf   : > { %1584 = vst [vmem:[%s3042_s26] sm:$0xff] %v1473_v10 }
 0xab0   : > { %v1482_v55 = vadd.f32 %v1655_v2, %v1474_v54 }
 0xab2   : > { %v1483_v59 = vmul.f32 0.5, %v1482_v55 }
 0xab4   : > { %2375 = vtanh.f32 %v1483_v59 }
 0xabe   : > { %v2376_v1 = vpop.eup %2375 }
 0xabf   : > { %v1485_v22 = vadd.f32 1.0, %v2376_v1 }
 0xac1   : > { %v1486_v17 = vmul.f32 0.5, %v1485_v22 }
 0xac3   : > { %v1488_v19 = vsub.f32 1.0, %v1486_v17  ;;  %v1487_v20 = vmul.f32 %v3032_v36, %v1486_v17 }
 0xac5   : > { %v1489_v25 = vmul.f32 %v1488_v19, %v1360_v30 }
 0xac7   : > { %v1490_v26 = vadd.f32 %v1489_v25, %v1487_v20 }
 0xac9   : > { %2063 = vmatmul.mubr.f32.vlgmr.msra.gmra.mrb[68].mxu1 %v1490_v26 }
 0xb9c   : > { %v1580_v35 = vpop.f32.mrb[68].mxu1 }
 0xb9d   : > { %v1581_v50 = vadd.f32 %v1656_v28, %v1580_v35  ;;  %v2064_v38 = vpop.f32.mrb[69].mxu1 }
 0xb9f   : > { %1586 = vst [vmem:[%s3042_s26 + $0x10] sm:$0xff] %v1581_v50 }
 0xba0 PF: > { %s14_s15 = sadd.s32 1, %s2383_s15  }
 0xba1   : > { %p11_p4 = scmp.ge.s32.totalorder %s14_s15, 4  }
 0xba3   :  { %13 = sbr.rel (!%p11_p4) target bundleno = 1 (0x1), region = 66 }

</bundles_post_ra>
